<compile_context>
chip_gen: v7x
topology: tpu7x:2x2x1
jax: 0.10.0
libtpu: 0.0.40
codegen_flags: <defaults>
</compile_context>

<pallas_src>
import functools
import math

import jax
import jax.numpy as jnp
from jax.experimental import pallas as pl
from jax.experimental.pallas import tpu as pltpu


def _round_up(x, m):
    return (x + m - 1) // m * m


def _nbytes(shape, dtype):
    return math.prod(shape) * jnp.dtype(dtype).itemsize


def _single_buffered_spec(shape, index_map):
    """BlockSpec for constant blocks: single-buffered to halve VMEM residency."""
    try:
        return pl.BlockSpec(shape, index_map, pipeline_mode=pl.Buffered(1))
    except TypeError:  # older jax without the pipeline_mode kwarg
        return pl.BlockSpec(shape, index_map)


# --------------------------------- kernel -------------------------------------

def gru_chunk_kernel(maxlen_ref, x_ref, h0_ref, wih_ref, whh_ref, bi_ref, bhn_ref,
                     len_ref, out_ref, hlast_ref, h_scratch, gi_scratch, mask_scratch,
                     *, unroll):
    Tc, Bt, Hp = x_ref.shape
    c = pl.program_id(1)                       # time-chunk index (serial axis)
    t0 = c * Tc
    # Chunks entirely past the longest sequence only zero their output.
    # Chunk 0 always runs so h_scratch / hlast get initialized.
    active = jnp.logical_or(c == 0, t0 < maxlen_ref[0])

    @pl.when(active)
    def _():
        @pl.when(c == 0)
        def _():
            h_scratch[...] = h0_ref[...]

        # ---- Validity mask for the whole chunk (hoisted out of the loop) ----
        steps = t0 + jax.lax.broadcasted_iota(jnp.int32, (Tc, Bt, 1), 0)
        mask_scratch[...] = (steps < len_ref[...][None, :, :]).astype(jnp.float32)

        # ---- Hoisted input projection: one big MXU matmul per chunk ----
        # (bih + bhh_r + bhh_z already folded into bi by the wrapper.)
        # NOTE: the (Tc,Bt,Hp)->(Tc*Bt,Hp) reshape is a free sublane merge only
        # because Bt is padded to a sublane multiple -- keep that invariant.
        x_flat = x_ref[...].reshape(Tc * Bt, Hp)
        gi = jnp.dot(x_flat, wih_ref[...],
                     preferred_element_type=jnp.float32) + bi_ref[...]
        gi_scratch[...] = gi.reshape(Tc, Bt, 3 * Hp).astype(gi_scratch.dtype)

        whh = whh_ref[...]
        bhn = bhn_ref[...]                     # (1, Hp) n-gate hidden bias (f32)

        # ---- Serial recurrence: one (Bt,Hp)x(Hp,3Hp) matmul + gates per step ----
        def step(t, h):
            gi_t = gi_scratch[t].astype(jnp.float32)                  # (Bt, 3Hp)
            gh = jnp.dot(h.astype(whh.dtype), whh,
                         preferred_element_type=jnp.float32)          # (Bt, 3Hp)
            r = jax.nn.sigmoid(gi_t[:, 0:Hp] + gh[:, 0:Hp])
            z = jax.nn.sigmoid(gi_t[:, Hp:2 * Hp] + gh[:, Hp:2 * Hp])
            n = jnp.tanh(gi_t[:, 2 * Hp:] + r * (gh[:, 2 * Hp:] + bhn))
            h_new = (1.0 - z) * n + z * h
            v = mask_scratch[t]                                       # (Bt,1) in {0,1}
            # pad_packed_sequence semantics: zero output at padded steps,
            # hidden state freezes after the last valid step.
            out_ref[t] = (h_new * v).astype(out_ref.dtype)
            return h_new * v + h * (1.0 - v)

        h = jax.lax.fori_loop(0, Tc, step, h_scratch[...], unroll=unroll)
        h_scratch[...] = h                    # carry across time chunks
        hlast_ref[...] = h                    # resident output block; final value wins

    @pl.when(jnp.logical_not(active))
    def _():
        out_ref[...] = jnp.zeros_like(out_ref)


# ------------------------------- layer wrapper --------------------------------

def gru_layer(x_tbh, h0, wih, whh, bi, bhn, lens2d, maxlen, *,
              time_chunk, batch_tile=None):
    """x_tbh: (Tp, Bp, Hp) padded time-major. Returns (out (Tp,Bp,Hp), hlast (Bp,Hp))."""
    Tp, Bp, Hp = x_tbh.shape
    Tc = time_chunk
    assert Tp % Tc == 0
    Bt = batch_tile if batch_tile is not None else Bp
    assert Bp % Bt == 0 and Bt % 8 == 0
    n_b, n_c = Bp // Bt, Tp // Tc

    act_dtype = x_tbh.dtype
    w_dtype = wih.dtype
    # Scale unroll with the batch tile so the unrolled body doesn't spill.
    unroll = min(Tc, 8) if Bt <= 32 else min(Tc, 4)
    kernel = functools.partial(gru_chunk_kernel, unroll=unroll)

    # Explicit VMEM budget: x/out double-buffered, weights single-buffered.
    vmem_bytes = (
        4 * _nbytes((Tc, Bt, Hp), act_dtype)            # x + out blocks
        + 2 * _nbytes((Hp, 3 * Hp), w_dtype)            # wih + whh
        + 4 * _nbytes((Bt, Hp), jnp.float32)            # h0 + hlast (+ buffers)
        + _nbytes((8, 3 * Hp), jnp.float32)             # bi (sublane padded)
        + _nbytes((8, Hp), jnp.float32)                 # bhn
        + 2 * _nbytes((Bt, 128), jnp.int32)             # lens (lane padded)
        + _nbytes((Bt, Hp), jnp.float32)                # carried hidden scratch
        + _nbytes((Tc, Bt, 3 * Hp), w_dtype)            # hoisted gi scratch
        + _nbytes((Tc, Bt, 128), jnp.float32)           # validity mask scratch
    )
    vmem_limit = int(min(max(2 * vmem_bytes + (8 << 20), 32 << 20), 110 << 20))

    grid_spec = pltpu.PrefetchScalarGridSpec(
        num_scalar_prefetch=1,                           # max(lengths) in SMEM
        grid=(n_b, n_c),                                 # (batch tile, time chunk)
        in_specs=[
            pl.BlockSpec((Tc, Bt, Hp), lambda b, c, ml: (c, b, 0)),      # x
            pl.BlockSpec((Bt, Hp), lambda b, c, ml: (b, 0)),             # h0
            _single_buffered_spec((Hp, 3 * Hp), lambda b, c, ml: (0, 0)),  # wih
            _single_buffered_spec((Hp, 3 * Hp), lambda b, c, ml: (0, 0)),  # whh
            _single_buffered_spec((1, 3 * Hp), lambda b, c, ml: (0, 0)),   # folded bias
            _single_buffered_spec((1, Hp), lambda b, c, ml: (0, 0)),       # bhh_n
            pl.BlockSpec((Bt, 1), lambda b, c, ml: (b, 0)),              # lengths
        ],
        out_specs=(
            pl.BlockSpec((Tc, Bt, Hp), lambda b, c, ml: (c, b, 0)),      # outputs
            pl.BlockSpec((Bt, Hp), lambda b, c, ml: (b, 0)),             # last hidden
        ),
        scratch_shapes=[
            pltpu.VMEM((Bt, Hp), jnp.float32),           # carried hidden state
            pltpu.VMEM((Tc, Bt, 3 * Hp), w_dtype),       # hoisted gi (compute dtype)
            pltpu.VMEM((Tc, Bt, 1), jnp.float32),        # per-chunk validity mask
        ],
    )
    return pl.pallas_call(
        kernel,
        out_shape=(jax.ShapeDtypeStruct((Tp, Bp, Hp), act_dtype),
                   jax.ShapeDtypeStruct((Bp, Hp), jnp.float32)),
        grid_spec=grid_spec,
        compiler_params=pltpu.CompilerParams(
            dimension_semantics=("parallel", "arbitrary"),  # batch || , time serial
            vmem_limit_bytes=vmem_limit),
    )(maxlen, x_tbh, h0, wih, whh, bi, bhn, lens2d)


# ----------------------------- parameter handling -----------------------------

def init_encoder_params(key, input_size, hidden_size, num_layers, batch_size):
    """Deterministic parameter init mirroring nn.Embedding / nn.GRU shapes."""
    keys = jax.random.split(key, 2 + 4 * num_layers + 1)
    k = 1.0 / jnp.sqrt(hidden_size)
    params = {}
    params["embedding"] = jax.random.normal(keys[0], (input_size, hidden_size),
                                            jnp.float32)
    wih, whh, bih, bhh = [], [], [], []
    for layer in range(num_layers):
        kw = keys[2 + 4 * layer: 2 + 4 * (layer + 1)]
        in_dim = hidden_size   # layer-0 input is the embedding (== hidden_size)
        # stored transposed relative to PyTorch: (in, 3H) / (H, 3H), gates [r|z|n]
        wih.append(jax.random.uniform(kw[0], (in_dim, 3 * hidden_size),
                                      jnp.float32, -k, k))
        whh.append(jax.random.uniform(kw[1], (hidden_size, 3 * hidden_size),
                                      jnp.float32, -k, k))
        bih.append(jax.random.uniform(kw[2], (1, 3 * hidden_size), jnp.float32, -k, k))
        bhh.append(jax.random.uniform(kw[3], (1, 3 * hidden_size), jnp.float32, -k, k))
    params["wih"], params["whh"], params["bih"], params["bhh"] = wih, whh, bih, bhh
    # init_hidden: torch.randn(num_layers, batch, hidden) -- deterministic stand-in
    params["h0"] = jax.random.normal(keys[-1], (num_layers, batch_size, hidden_size),
                                     jnp.float32)
    return params


def _pad_gate_cols(w, H, Hp):
    """Pad the last axis (3H, gates [r|z|n]) to 3Hp with zero-padding per gate block."""
    parts = []
    for g in range(3):
        p = w[..., g * H:(g + 1) * H]
        pad = [(0, 0)] * (w.ndim - 1) + [(0, Hp - H)]
        parts.append(jnp.pad(p, pad))
    return jnp.concatenate(parts, axis=-1)


def prepare_layer_params(wih, whh, bih, bhh, H, Hp, compute_dtype):
    """Pad weights to lane/sublane-aligned tiles, fold biases, pre-cast weights.

    bi = bih + [bhh_r | bhh_z | 0]  (foldable out of the serial loop, kept f32)
    bhn = bhh_n (must stay inside: n = tanh(i_n + r*(h@Whh_n + bhh_n)), kept f32)
    """
    wih_p = _pad_gate_cols(jnp.pad(wih, ((0, Hp - wih.shape[0]), (0, 0))), H, Hp)
    whh_p = _pad_gate_cols(jnp.pad(whh, ((0, Hp - whh.shape[0]), (0, 0))), H, Hp)
    bi = bih + jnp.concatenate(
        [bhh[:, 0:H], bhh[:, H:2 * H], jnp.zeros((1, H), bih.dtype)], axis=-1)
    bi_p = _pad_gate_cols(bi, H, Hp)
    bhn_p = jnp.pad(bhh[:, 2 * H:3 * H], ((0, 0), (0, Hp - H)))
    return (wih_p.astype(compute_dtype), whh_p.astype(compute_dtype),
            bi_p.astype(jnp.float32), bhn_p.astype(jnp.float32))


# --------------------------------- forward ------------------------------------

def encoder_forward(params, tokens, lengths, num_layers, *, time_chunk=32,
                    compute_dtype=jnp.bfloat16, batch_tile=None):
    """tokens: (B, T) int32, lengths: (B,) int32.
    Returns (outputs (B, T, H) f32, last_hidden (num_layers, B, H) f32).
    compute_dtype=bf16 recommended on v5e/v6e/v7x (f32 gate math / accumulation kept).
    On v7x with B >= 16, pass batch_tile=round_up(B,8)//2 to use both TensorCores."""
    B, T = tokens.shape
    H = params["embedding"].shape[1]
    Hp = _round_up(H, 128)          # lane-align hidden and every gate block
    Bp = _round_up(B, 8)            # sublane-align batch
    Tc = min(time_chunk, max(8, _round_up(T, 8)))
    Tp = _round_up(T, Tc)

    emb = jnp.take(params["embedding"], tokens, axis=0)          # (B, T, H) gather (glue)
    x = jnp.transpose(emb, (1, 0, 2)).astype(compute_dtype)      # (T, B, H) time-major
    x = jnp.pad(x, ((0, Tp - T), (0, Bp - B), (0, Hp - H)))      # hardware-tile padding

    lens = jnp.pad(lengths.astype(jnp.int32), (0, Bp - B)).reshape(Bp, 1)
    maxlen = jnp.reshape(jnp.max(lengths).astype(jnp.int32), (1,))

    h_lasts = []
    for layer in range(num_layers):
        wih_p, whh_p, bi_p, bhn_p = prepare_layer_params(
            params["wih"][layer], params["whh"][layer],
            params["bih"][layer], params["bhh"][layer], H, Hp, compute_dtype)
        h0_p = jnp.pad(params["h0"][layer], ((0, Bp - B), (0, Hp - H)))
        x, h_last = gru_layer(x, h0_p, wih_p, whh_p, bi_p, bhn_p, lens, maxlen,
                              time_chunk=Tc, batch_tile=batch_tile)
        h_lasts.append(h_last[:B, :H])

    outputs = jnp.transpose(x[:T, :B, :H], (1, 0, 2)).astype(jnp.float32)
    last_hidden = jnp.stack(h_lasts, axis=0)                     # (num_layers, B, H)
    # TODO(synk): if max(lengths) < T, slice outputs[:, :int(max(lengths))] host-side
    #             to match pad_packed_sequence's shorter output exactly.
    return outputs, last_hidden


def reference_forward(params, tokens, lengths, num_layers):
    """Pure-JAX f32 reference of the same semantics, for validation."""
    H = params["embedding"].shape[1]
    emb = jnp.take(params["embedding"], tokens, axis=0)
    x = jnp.transpose(emb, (1, 0, 2))                            # (T, B, H)
    lens = lengths.reshape(-1, 1).astype(jnp.int32)
    h_lasts = []
    for layer in range(num_layers):
        wih, whh = params["wih"][layer], params["whh"][layer]
        bih, bhh = params["bih"][layer], params["bhh"][layer]

        def step(h, xt_t):
            xt, t = xt_t
            gi = xt @ wih + bih
            gh = h @ whh + bhh
            r = jax.nn.sigmoid(gi[:, :H] + gh[:, :H])
            z = jax.nn.sigmoid(gi[:, H:2 * H] + gh[:, H:2 * H])
            n = jnp.tanh(gi[:, 2 * H:] + r * gh[:, 2 * H:])
            h_new = (1 - z) * n + z * h
            valid = t < lens
            return jnp.where(valid, h_new, h), jnp.where(valid, h_new, 0.0)

        T = x.shape[0]
        h_fin, outs = jax.lax.scan(step, params["h0"][layer],
                                   (x, jnp.arange(T, dtype=jnp.int32)))
        x = outs
        h_lasts.append(h_fin)
    return jnp.transpose(x, (1, 0, 2)), jnp.stack(h_lasts, axis=0)


if __name__ == "__main__":
    input_size = 50      # vocab
    hidden_size = 32
    num_layers = 2
    batch_size = 2
    seq_len = 8

    key = jax.random.PRNGKey(0)
    k_tok, k_par = jax.random.split(key)

    tokens = jax.random.randint(k_tok, (batch_size, seq_len), 0, input_size, jnp.int32)
    lengths = jnp.array([seq_len, 5], dtype=jnp.int32)

    params = init_encoder_params(k_par, input_size, hidden_size, num_layers, batch_size)

    ref_out, ref_h = reference_forward(params, tokens, lengths, num_layers)

    # f32 compute path. Tolerance accounts for MXU default-precision differences
    # between the Pallas lowering and the XLA reference matmuls.
    out32, h32 = encoder_forward(params, tokens, lengths, num_layers,
                                 time_chunk=8, compute_dtype=jnp.float32)
    out32 = out32.block_until_ready()
    h32 = h32.block_until_ready()
    assert out32.shape == (batch_size, seq_len, hidden_size)
    assert h32.shape == (num_layers, batch_size, hidden_size)
    assert jnp.allclose(out32, ref_out, atol=2e-2, rtol=2e-2)
    assert jnp.allclose(h32, ref_h, atol=2e-2, rtol=2e-2)

    # bf16 compute path (recommended production setting) -- looser tolerance.
    out16, h16 = encoder_forward(params, tokens, lengths, num_layers,
                                 time_chunk=8, compute_dtype=jnp.bfloat16)
    out16 = out16.block_until_ready()
    h16 = h16.block_until_ready()
    assert out16.shape == (batch_size, seq_len, hidden_size)
    assert h16.shape == (num_layers, batch_size, hidden_size)
    assert jnp.allclose(out16, ref_out, atol=1e-1, rtol=1e-1)
    assert jnp.allclose(h16, ref_h, atol=1e-1, rtol=1e-1)

    print("KERNEL_OK")
</pallas_src>

<mosaic_0001>
module attributes {stable_mosaic.version = 11 : i64} {
  func.func @gru_chunk_kernel(%arg0: i32, %arg1: i32, %arg2: memref<1xi32, #tpu.memory_space<smem>>, %arg3: memref<8x8x128xf32, #tpu.memory_space<vmem>>, %arg4: memref<8x128xf32, #tpu.memory_space<vmem>>, %arg5: memref<128x384xf32, #tpu.memory_space<vmem>>, %arg6: memref<128x384xf32, #tpu.memory_space<vmem>>, %arg7: memref<1x384xf32, #tpu.memory_space<vmem>>, %arg8: memref<1x128xf32, #tpu.memory_space<vmem>>, %arg9: memref<8x1xi32, #tpu.memory_space<vmem>>, %arg10: memref<8x8x128xf32, #tpu.memory_space<vmem>>, %arg11: memref<8x128xf32, #tpu.memory_space<vmem>>, %arg12: memref<8x128xf32, #tpu.memory_space<vmem>>, %arg13: memref<8x8x384xf32, #tpu.memory_space<vmem>>, %arg14: memref<8x8x1xf32, #tpu.memory_space<vmem>>) attributes {dimension_semantics = [#tpu.dimension_semantics<parallel>, #tpu.dimension_semantics<arbitrary>], iteration_bounds = array<i64: 1, 1>, scalar_prefetch = 1 : i64, scratch_operands = 3 : i64, tpu.core_type = #tpu.core_type<tc>, window_params = [{transform_indices = @transform_0, window_bounds = array<i64: 8, 8, 128>}, {transform_indices = @transform_1, window_bounds = array<i64: 8, 128>}, {pipeline_mode = #tpu.pipeline_mode<synchronous>, transform_indices = @transform_2, window_bounds = array<i64: 128, 384>}, {pipeline_mode = #tpu.pipeline_mode<synchronous>, transform_indices = @transform_3, window_bounds = array<i64: 128, 384>}, {pipeline_mode = #tpu.pipeline_mode<synchronous>, transform_indices = @transform_4, window_bounds = array<i64: 1, 384>}, {pipeline_mode = #tpu.pipeline_mode<synchronous>, transform_indices = @transform_5, window_bounds = array<i64: 1, 128>}, {transform_indices = @transform_6, window_bounds = array<i64: 8, 1>}, {transform_indices = @transform_7, window_bounds = array<i64: 8, 8, 128>}, {transform_indices = @transform_8, window_bounds = array<i64: 8, 128>}]} {
    %c8_i32 = arith.constant 8 : i32
    %0 = arith.muli %arg1, %c8_i32 : i32
    %c0_i32 = arith.constant 0 : i32
    %1 = arith.cmpi eq, %arg1, %c0_i32 : i32
    %c0 = arith.constant 0 : index
    %2 = memref.load %arg2[%c0] : memref<1xi32, #tpu.memory_space<smem>>
    %3 = arith.cmpi slt, %0, %2 : i32
    %4 = arith.ori %1, %3 : i1
    %5 = arith.extui %4 : i1 to i32
    %c0_i32_0 = arith.constant 0 : i32
    %6 = arith.cmpi ne, %5, %c0_i32_0 : i32
    scf.if %6 {
      %c0_i32_2 = arith.constant 0 : i32
      %10 = arith.cmpi eq, %arg1, %c0_i32_2 : i32
      %11 = arith.extui %10 : i1 to i32
      %c0_i32_3 = arith.constant 0 : i32
      %12 = arith.cmpi ne, %11, %c0_i32_3 : i32
      scf.if %12 {
        %c0_119 = arith.constant 0 : index
        %c0_120 = arith.constant 0 : index
        %421 = vector.load %arg4[%c0_119, %c0_120] : memref<8x128xf32, #tpu.memory_space<vmem>>, vector<8x128xf32>
        %c0_121 = arith.constant 0 : index
        %c0_122 = arith.constant 0 : index
        %422 = vector.load %arg12[%c0_121, %c0_122] : memref<8x128xf32, #tpu.memory_space<vmem>>, vector<8x128xf32>
        tpu.vector_store %arg12[%c0_121, %c0_122], %421 {strides = array<i32>} : memref<8x128xf32, #tpu.memory_space<vmem>>, vector<8x128xf32>,
      } else {
      }
      %13 = tpu.iota {dimensions = array<i32: 0>} : vector<8x8x1xi32>
      %14 = vector.broadcast %0 : i32 to vector<8x8x1xi32>
      %15 = arith.addi %14, %13 : vector<8x8x1xi32>
      %c0_4 = arith.constant 0 : index
      %c0_5 = arith.constant 0 : index
      %16 = vector.load %arg9[%c0_4, %c0_5] : memref<8x1xi32, #tpu.memory_space<vmem>>, vector<8x1xi32>
      %17 = vector.shape_cast %16 : vector<8x1xi32> to vector<1x8x1xi32>
      %18 = vector.broadcast %17 : vector<1x8x1xi32> to vector<8x8x1xi32>
      %19 = arith.cmpi slt, %15, %18 : vector<8x8x1xi32>
      %20 = arith.extui %19 : vector<8x8x1xi1> to vector<8x8x1xi32>
      %21 = arith.sitofp %20 : vector<8x8x1xi32> to vector<8x8x1xf32>
      %c0_6 = arith.constant 0 : index
      %c0_7 = arith.constant 0 : index
      %c0_8 = arith.constant 0 : index
      %22 = vector.load %arg14[%c0_6, %c0_7, %c0_8] : memref<8x8x1xf32, #tpu.memory_space<vmem>>, vector<8x8x1xf32>
      tpu.vector_store %arg14[%c0_6, %c0_7, %c0_8], %21 {strides = array<i32>} : memref<8x8x1xf32, #tpu.memory_space<vmem>>, vector<8x8x1xf32>,
      %c0_9 = arith.constant 0 : index
      %c0_10 = arith.constant 0 : index
      %c0_11 = arith.constant 0 : index
      %23 = vector.load %arg3[%c0_9, %c0_10, %c0_11] : memref<8x8x128xf32, #tpu.memory_space<vmem>>, vector<8x8x128xf32>
      %24 = vector.shape_cast %23 : vector<8x8x128xf32> to vector<64x128xf32>
      %c0_12 = arith.constant 0 : index
      %c0_13 = arith.constant 0 : index
      %25 = vector.load %arg5[%c0_12, %c0_13] : memref<128x384xf32, #tpu.memory_space<vmem>>, vector<128x384xf32>
      %cst = arith.constant dense<0.000000e+00> : vector<64x384xf32>
      %26 = tpu.matmul %24, %25, %cst {dimension_numbers = #tpu.dot_dimension_numbers<[1], [0], [0], [1], [0, 0, 1, 1], [], []>} : vector<64x128xf32>, vector<128x384xf32>, vector<64x384xf32> -> vector<64x384xf32>
      %c0_14 = arith.constant 0 : index
      %c0_15 = arith.constant 0 : index
      %27 = vector.load %arg7[%c0_14, %c0_15] : memref<1x384xf32, #tpu.memory_space<vmem>>, vector<1x384xf32>
      %28 = vector.broadcast %27 : vector<1x384xf32> to vector<64x384xf32>
      %29 = arith.addf %26, %28 : vector<64x384xf32>
      %30 = vector.shape_cast %29 : vector<64x384xf32> to vector<8x8x384xf32>
      %c0_16 = arith.constant 0 : index
      %c0_17 = arith.constant 0 : index
      %c0_18 = arith.constant 0 : index
      %31 = vector.load %arg13[%c0_16, %c0_17, %c0_18] : memref<8x8x384xf32, #tpu.memory_space<vmem>>, vector<8x8x384xf32>
      tpu.vector_store %arg13[%c0_16, %c0_17, %c0_18], %30 {strides = array<i32>} : memref<8x8x384xf32, #tpu.memory_space<vmem>>, vector<8x8x384xf32>,
      %c0_19 = arith.constant 0 : index
      %c0_20 = arith.constant 0 : index
      %32 = vector.load %arg6[%c0_19, %c0_20] : memref<128x384xf32, #tpu.memory_space<vmem>>, vector<128x384xf32>
      %c0_21 = arith.constant 0 : index
      %c0_22 = arith.constant 0 : index
      %33 = vector.load %arg8[%c0_21, %c0_22] : memref<1x128xf32, #tpu.memory_space<vmem>>, vector<1x128xf32>
      %c0_23 = arith.constant 0 : index
      %c0_24 = arith.constant 0 : index
      %34 = vector.load %arg12[%c0_23, %c0_24] : memref<8x128xf32, #tpu.memory_space<vmem>>, vector<8x128xf32>
      %c0_i32_25 = arith.constant 0 : i32
      %35 = arith.index_cast %c0_i32_25 : i32 to index
      %c0_26 = arith.constant 0 : index
      %c0_27 = arith.constant 0 : index
      %36 = vector.load %arg13[%35, %c0_26, %c0_27] : memref<8x8x384xf32, #tpu.memory_space<vmem>>, vector<1x8x384xf32>
      %37 = vector.shape_cast %36 : vector<1x8x384xf32> to vector<8x384xf32>
      %cst_28 = arith.constant dense<0.000000e+00> : vector<8x384xf32>
      %38 = tpu.matmul %34, %32, %cst_28 {dimension_numbers = #tpu.dot_dimension_numbers<[1], [0], [0], [1], [0, 0, 1, 1], [], []>} : vector<8x128xf32>, vector<128x384xf32>, vector<8x384xf32> -> vector<8x384xf32>
      %39 = vector.extract_strided_slice %37 {offsets = [0, 0], sizes = [8, 128], strides = [1, 1]} : vector<8x384xf32> to vector<8x128xf32>
      %40 = vector.extract_strided_slice %38 {offsets = [0, 0], sizes = [8, 128], strides = [1, 1]} : vector<8x384xf32> to vector<8x128xf32>
      %41 = arith.addf %39, %40 : vector<8x128xf32>
      %42 = arith.negf %41 : vector<8x128xf32>
      %43 = math.exp %42 : vector<8x128xf32>
      %cst_29 = arith.constant 1.000000e+00 : f32
      %44 = vector.broadcast %cst_29 : f32 to vector<8x128xf32>
      %45 = arith.addf %44, %43 : vector<8x128xf32>
      %46 = arith.divf %44, %45 : vector<8x128xf32>
      %47 = vector.extract_strided_slice %37 {offsets = [0, 128], sizes = [8, 128], strides = [1, 1]} : vector<8x384xf32> to vector<8x128xf32>
      %48 = vector.extract_strided_slice %38 {offsets = [0, 128], sizes = [8, 128], strides = [1, 1]} : vector<8x384xf32> to vector<8x128xf32>
      %49 = arith.addf %47, %48 : vector<8x128xf32>
      %50 = arith.negf %49 : vector<8x128xf32>
      %51 = math.exp %50 : vector<8x128xf32>
      %cst_30 = arith.constant 1.000000e+00 : f32
      %52 = vector.broadcast %cst_30 : f32 to vector<8x128xf32>
      %53 = arith.addf %52, %51 : vector<8x128xf32>
      %54 = arith.divf %52, %53 : vector<8x128xf32>
      %55 = vector.extract_strided_slice %37 {offsets = [0, 256], sizes = [8, 128], strides = [1, 1]} : vector<8x384xf32> to vector<8x128xf32>
      %56 = vector.extract_strided_slice %38 {offsets = [0, 256], sizes = [8, 128], strides = [1, 1]} : vector<8x384xf32> to vector<8x128xf32>
      %57 = vector.broadcast %33 : vector<1x128xf32> to vector<8x128xf32>
      %58 = arith.addf %56, %57 : vector<8x128xf32>
      %59 = arith.mulf %46, %58 : vector<8x128xf32>
      %60 = arith.addf %55, %59 : vector<8x128xf32>
      %61 = math.tanh %60 : vector<8x128xf32>
      %cst_31 = arith.constant 1.000000e+00 : f32
      %62 = vector.broadcast %cst_31 : f32 to vector<8x128xf32>
      %63 = arith.subf %62, %54 : vector<8x128xf32>
      %64 = arith.mulf %63, %61 : vector<8x128xf32>
      %65 = arith.mulf %54, %34 : vector<8x128xf32>
      %66 = arith.addf %64, %65 : vector<8x128xf32>
      %67 = arith.index_cast %c0_i32_25 : i32 to index
      %c0_32 = arith.constant 0 : index
      %c0_33 = arith.constant 0 : index
      %68 = vector.load %arg14[%67, %c0_32, %c0_33] : memref<8x8x1xf32, #tpu.memory_space<vmem>>, vector<1x8x1xf32>
      %69 = vector.shape_cast %68 : vector<1x8x1xf32> to vector<8x1xf32>
      %70 = vector.broadcast %69 : vector<8x1xf32> to vector<8x128xf32>
      %71 = arith.mulf %66, %70 : vector<8x128xf32>
      %72 = arith.index_cast %c0_i32_25 : i32 to index
      %c0_34 = arith.constant 0 : index
      %c0_35 = arith.constant 0 : index
      %73 = vector.load %arg10[%72, %c0_34, %c0_35] : memref<8x8x128xf32, #tpu.memory_space<vmem>>, vector<1x8x128xf32>
      %74 = vector.shape_cast %73 : vector<1x8x128xf32> to vector<8x128xf32>
      %75 = vector.shape_cast %71 : vector<8x128xf32> to vector<1x8x128xf32>
      tpu.vector_store %arg10[%72, %c0_34, %c0_35], %75 {strides = array<i32>} : memref<8x8x128xf32, #tpu.memory_space<vmem>>, vector<1x8x128xf32>,
      %76 = vector.broadcast %69 : vector<8x1xf32> to vector<8x128xf32>
      %77 = arith.mulf %66, %76 : vector<8x128xf32>
      %cst_36 = arith.constant 1.000000e+00 : f32
      %78 = vector.broadcast %cst_36 : f32 to vector<8x1xf32>
      %79 = arith.subf %78, %69 : vector<8x1xf32>
      %80 = vector.broadcast %79 : vector<8x1xf32> to vector<8x128xf32>
      %81 = arith.mulf %34, %80 : vector<8x128xf32>
      %82 = arith.addf %77, %81 : vector<8x128xf32>
      %c1_i32 = arith.constant 1 : i32
      %83 = arith.index_cast %c1_i32 : i32 to index
      %c0_37 = arith.constant 0 : index
      %c0_38 = arith.constant 0 : index
      %84 = vector.load %arg13[%83, %c0_37, %c0_38] : memref<8x8x384xf32, #tpu.memory_space<vmem>>, vector<1x8x384xf32>
      %85 = vector.shape_cast %84 : vector<1x8x384xf32> to vector<8x384xf32>
      %cst_39 = arith.constant dense<0.000000e+00> : vector<8x384xf32>
      %86 = tpu.matmul %82, %32, %cst_39 {dimension_numbers = #tpu.dot_dimension_numbers<[1], [0], [0], [1], [0, 0, 1, 1], [], []>} : vector<8x128xf32>, vector<128x384xf32>, vector<8x384xf32> -> vector<8x384xf32>
      %87 = vector.extract_strided_slice %85 {offsets = [0, 0], sizes = [8, 128], strides = [1, 1]} : vector<8x384xf32> to vector<8x128xf32>
      %88 = vector.extract_strided_slice %86 {offsets = [0, 0], sizes = [8, 128], strides = [1, 1]} : vector<8x384xf32> to vector<8x128xf32>
      %89 = arith.addf %87, %88 : vector<8x128xf32>
      %90 = arith.negf %89 : vector<8x128xf32>
      %91 = math.exp %90 : vector<8x128xf32>
      %cst_40 = arith.constant 1.000000e+00 : f32
      %92 = vector.broadcast %cst_40 : f32 to vector<8x128xf32>
      %93 = arith.addf %92, %91 : vector<8x128xf32>
      %94 = arith.divf %92, %93 : vector<8x128xf32>
      %95 = vector.extract_strided_slice %85 {offsets = [0, 128], sizes = [8, 128], strides = [1, 1]} : vector<8x384xf32> to vector<8x128xf32>
      %96 = vector.extract_strided_slice %86 {offsets = [0, 128], sizes = [8, 128], strides = [1, 1]} : vector<8x384xf32> to vector<8x128xf32>
      %97 = arith.addf %95, %96 : vector<8x128xf32>
      %98 = arith.negf %97 : vector<8x128xf32>
      %99 = math.exp %98 : vector<8x128xf32>
      %cst_41 = arith.constant 1.000000e+00 : f32
      %100 = vector.broadcast %cst_41 : f32 to vector<8x128xf32>
      %101 = arith.addf %100, %99 : vector<8x128xf32>
      %102 = arith.divf %100, %101 : vector<8x128xf32>
      %103 = vector.extract_strided_slice %85 {offsets = [0, 256], sizes = [8, 128], strides = [1, 1]} : vector<8x384xf32> to vector<8x128xf32>
      %104 = vector.extract_strided_slice %86 {offsets = [0, 256], sizes = [8, 128], strides = [1, 1]} : vector<8x384xf32> to vector<8x128xf32>
      %105 = vector.broadcast %33 : vector<1x128xf32> to vector<8x128xf32>
      %106 = arith.addf %104, %105 : vector<8x128xf32>
      %107 = arith.mulf %94, %106 : vector<8x128xf32>
      %108 = arith.addf %103, %107 : vector<8x128xf32>
      %109 = math.tanh %108 : vector<8x128xf32>
      %cst_42 = arith.constant 1.000000e+00 : f32
      %110 = vector.broadcast %cst_42 : f32 to vector<8x128xf32>
      %111 = arith.subf %110, %102 : vector<8x128xf32>
      %112 = arith.mulf %111, %109 : vector<8x128xf32>
      %113 = arith.mulf %102, %82 : vector<8x128xf32>
      %114 = arith.addf %112, %113 : vector<8x128xf32>
      %115 = arith.index_cast %c1_i32 : i32 to index
      %c0_43 = arith.constant 0 : index
      %c0_44 = arith.constant 0 : index
      %116 = vector.load %arg14[%115, %c0_43, %c0_44] : memref<8x8x1xf32, #tpu.memory_space<vmem>>, vector<1x8x1xf32>
      %117 = vector.shape_cast %116 : vector<1x8x1xf32> to vector<8x1xf32>
      %118 = vector.broadcast %117 : vector<8x1xf32> to vector<8x128xf32>
      %119 = arith.mulf %114, %118 : vector<8x128xf32>
      %120 = arith.index_cast %c1_i32 : i32 to index
      %c0_45 = arith.constant 0 : index
      %c0_46 = arith.constant 0 : index
      %121 = vector.load %arg10[%120, %c0_45, %c0_46] : memref<8x8x128xf32, #tpu.memory_space<vmem>>, vector<1x8x128xf32>
      %122 = vector.shape_cast %121 : vector<1x8x128xf32> to vector<8x128xf32>
      %123 = vector.shape_cast %119 : vector<8x128xf32> to vector<1x8x128xf32>
      tpu.vector_store %arg10[%120, %c0_45, %c0_46], %123 {strides = array<i32>} : memref<8x8x128xf32, #tpu.memory_space<vmem>>, vector<1x8x128xf32>,
      %124 = vector.broadcast %117 : vector<8x1xf32> to vector<8x128xf32>
      %125 = arith.mulf %114, %124 : vector<8x128xf32>
      %cst_47 = arith.constant 1.000000e+00 : f32
      %126 = vector.broadcast %cst_47 : f32 to vector<8x1xf32>
      %127 = arith.subf %126, %117 : vector<8x1xf32>
      %128 = vector.broadcast %127 : vector<8x1xf32> to vector<8x128xf32>
      %129 = arith.mulf %82, %128 : vector<8x128xf32>
      %130 = arith.addf %125, %129 : vector<8x128xf32>
      %c2_i32 = arith.constant 2 : i32
      %131 = arith.index_cast %c2_i32 : i32 to index
      %c0_48 = arith.constant 0 : index
      %c0_49 = arith.constant 0 : index
      %132 = vector.load %arg13[%131, %c0_48, %c0_49] : memref<8x8x384xf32, #tpu.memory_space<vmem>>, vector<1x8x384xf32>
      %133 = vector.shape_cast %132 : vector<1x8x384xf32> to vector<8x384xf32>
      %cst_50 = arith.constant dense<0.000000e+00> : vector<8x384xf32>
      %134 = tpu.matmul %130, %32, %cst_50 {dimension_numbers = #tpu.dot_dimension_numbers<[1], [0], [0], [1], [0, 0, 1, 1], [], []>} : vector<8x128xf32>, vector<128x384xf32>, vector<8x384xf32> -> vector<8x384xf32>
      %135 = vector.extract_strided_slice %133 {offsets = [0, 0], sizes = [8, 128], strides = [1, 1]} : vector<8x384xf32> to vector<8x128xf32>
      %136 = vector.extract_strided_slice %134 {offsets = [0, 0], sizes = [8, 128], strides = [1, 1]} : vector<8x384xf32> to vector<8x128xf32>
      %137 = arith.addf %135, %136 : vector<8x128xf32>
      %138 = arith.negf %137 : vector<8x128xf32>
      %139 = math.exp %138 : vector<8x128xf32>
      %cst_51 = arith.constant 1.000000e+00 : f32
      %140 = vector.broadcast %cst_51 : f32 to vector<8x128xf32>
      %141 = arith.addf %140, %139 : vector<8x128xf32>
      %142 = arith.divf %140, %141 : vector<8x128xf32>
      %143 = vector.extract_strided_slice %133 {offsets = [0, 128], sizes = [8, 128], strides = [1, 1]} : vector<8x384xf32> to vector<8x128xf32>
      %144 = vector.extract_strided_slice %134 {offsets = [0, 128], sizes = [8, 128], strides = [1, 1]} : vector<8x384xf32> to vector<8x128xf32>
      %145 = arith.addf %143, %144 : vector<8x128xf32>
      %146 = arith.negf %145 : vector<8x128xf32>
      %147 = math.exp %146 : vector<8x128xf32>
      %cst_52 = arith.constant 1.000000e+00 : f32
      %148 = vector.broadcast %cst_52 : f32 to vector<8x128xf32>
      %149 = arith.addf %148, %147 : vector<8x128xf32>
      %150 = arith.divf %148, %149 : vector<8x128xf32>
      %151 = vector.extract_strided_slice %133 {offsets = [0, 256], sizes = [8, 128], strides = [1, 1]} : vector<8x384xf32> to vector<8x128xf32>
      %152 = vector.extract_strided_slice %134 {offsets = [0, 256], sizes = [8, 128], strides = [1, 1]} : vector<8x384xf32> to vector<8x128xf32>
      %153 = vector.broadcast %33 : vector<1x128xf32> to vector<8x128xf32>
      %154 = arith.addf %152, %153 : vector<8x128xf32>
      %155 = arith.mulf %142, %154 : vector<8x128xf32>
      %156 = arith.addf %151, %155 : vector<8x128xf32>
      %157 = math.tanh %156 : vector<8x128xf32>
      %cst_53 = arith.constant 1.000000e+00 : f32
      %158 = vector.broadcast %cst_53 : f32 to vector<8x128xf32>
      %159 = arith.subf %158, %150 : vector<8x128xf32>
      %160 = arith.mulf %159, %157 : vector<8x128xf32>
      %161 = arith.mulf %150, %130 : vector<8x128xf32>
      %162 = arith.addf %160, %161 : vector<8x128xf32>
      %163 = arith.index_cast %c2_i32 : i32 to index
      %c0_54 = arith.constant 0 : index
      %c0_55 = arith.constant 0 : index
      %164 = vector.load %arg14[%163, %c0_54, %c0_55] : memref<8x8x1xf32, #tpu.memory_space<vmem>>, vector<1x8x1xf32>
      %165 = vector.shape_cast %164 : vector<1x8x1xf32> to vector<8x1xf32>
      %166 = vector.broadcast %165 : vector<8x1xf32> to vector<8x128xf32>
      %167 = arith.mulf %162, %166 : vector<8x128xf32>
      %168 = arith.index_cast %c2_i32 : i32 to index
      %c0_56 = arith.constant 0 : index
      %c0_57 = arith.constant 0 : index
      %169 = vector.load %arg10[%168, %c0_56, %c0_57] : memref<8x8x128xf32, #tpu.memory_space<vmem>>, vector<1x8x128xf32>
      %170 = vector.shape_cast %169 : vector<1x8x128xf32> to vector<8x128xf32>
      %171 = vector.shape_cast %167 : vector<8x128xf32> to vector<1x8x128xf32>
      tpu.vector_store %arg10[%168, %c0_56, %c0_57], %171 {strides = array<i32>} : memref<8x8x128xf32, #tpu.memory_space<vmem>>, vector<1x8x128xf32>,
      %172 = vector.broadcast %165 : vector<8x1xf32> to vector<8x128xf32>
      %173 = arith.mulf %162, %172 : vector<8x128xf32>
      %cst_58 = arith.constant 1.000000e+00 : f32
      %174 = vector.broadcast %cst_58 : f32 to vector<8x1xf32>
      %175 = arith.subf %174, %165 : vector<8x1xf32>
      %176 = vector.broadcast %175 : vector<8x1xf32> to vector<8x128xf32>
      %177 = arith.mulf %130, %176 : vector<8x128xf32>
      %178 = arith.addf %173, %177 : vector<8x128xf32>
      %c3_i32 = arith.constant 3 : i32
      %179 = arith.index_cast %c3_i32 : i32 to index
      %c0_59 = arith.constant 0 : index
      %c0_60 = arith.constant 0 : index
      %180 = vector.load %arg13[%179, %c0_59, %c0_60] : memref<8x8x384xf32, #tpu.memory_space<vmem>>, vector<1x8x384xf32>
      %181 = vector.shape_cast %180 : vector<1x8x384xf32> to vector<8x384xf32>
      %cst_61 = arith.constant dense<0.000000e+00> : vector<8x384xf32>
      %182 = tpu.matmul %178, %32, %cst_61 {dimension_numbers = #tpu.dot_dimension_numbers<[1], [0], [0], [1], [0, 0, 1, 1], [], []>} : vector<8x128xf32>, vector<128x384xf32>, vector<8x384xf32> -> vector<8x384xf32>
      %183 = vector.extract_strided_slice %181 {offsets = [0, 0], sizes = [8, 128], strides = [1, 1]} : vector<8x384xf32> to vector<8x128xf32>
      %184 = vector.extract_strided_slice %182 {offsets = [0, 0], sizes = [8, 128], strides = [1, 1]} : vector<8x384xf32> to vector<8x128xf32>
      %185 = arith.addf %183, %184 : vector<8x128xf32>
      %186 = arith.negf %185 : vector<8x128xf32>
      %187 = math.exp %186 : vector<8x128xf32>
      %cst_62 = arith.constant 1.000000e+00 : f32
      %188 = vector.broadcast %cst_62 : f32 to vector<8x128xf32>
      %189 = arith.addf %188, %187 : vector<8x128xf32>
      %190 = arith.divf %188, %189 : vector<8x128xf32>
      %191 = vector.extract_strided_slice %181 {offsets = [0, 128], sizes = [8, 128], strides = [1, 1]} : vector<8x384xf32> to vector<8x128xf32>
      %192 = vector.extract_strided_slice %182 {offsets = [0, 128], sizes = [8, 128], strides = [1, 1]} : vector<8x384xf32> to vector<8x128xf32>
      %193 = arith.addf %191, %192 : vector<8x128xf32>
      %194 = arith.negf %193 : vector<8x128xf32>
      %195 = math.exp %194 : vector<8x128xf32>
      %cst_63 = arith.constant 1.000000e+00 : f32
      %196 = vector.broadcast %cst_63 : f32 to vector<8x128xf32>
      %197 = arith.addf %196, %195 : vector<8x128xf32>
      %198 = arith.divf %196, %197 : vector<8x128xf32>
      %199 = vector.extract_strided_slice %181 {offsets = [0, 256], sizes = [8, 128], strides = [1, 1]} : vector<8x384xf32> to vector<8x128xf32>
      %200 = vector.extract_strided_slice %182 {offsets = [0, 256], sizes = [8, 128], strides = [1, 1]} : vector<8x384xf32> to vector<8x128xf32>
      %201 = vector.broadcast %33 : vector<1x128xf32> to vector<8x128xf32>
      %202 = arith.addf %200, %201 : vector<8x128xf32>
      %203 = arith.mulf %190, %202 : vector<8x128xf32>
      %204 = arith.addf %199, %203 : vector<8x128xf32>
      %205 = math.tanh %204 : vector<8x128xf32>
      %cst_64 = arith.constant 1.000000e+00 : f32
      %206 = vector.broadcast %cst_64 : f32 to vector<8x128xf32>
      %207 = arith.subf %206, %198 : vector<8x128xf32>
      %208 = arith.mulf %207, %205 : vector<8x128xf32>
      %209 = arith.mulf %198, %178 : vector<8x128xf32>
      %210 = arith.addf %208, %209 : vector<8x128xf32>
      %211 = arith.index_cast %c3_i32 : i32 to index
      %c0_65 = arith.constant 0 : index
      %c0_66 = arith.constant 0 : index
      %212 = vector.load %arg14[%211, %c0_65, %c0_66] : memref<8x8x1xf32, #tpu.memory_space<vmem>>, vector<1x8x1xf32>
      %213 = vector.shape_cast %212 : vector<1x8x1xf32> to vector<8x1xf32>
      %214 = vector.broadcast %213 : vector<8x1xf32> to vector<8x128xf32>
      %215 = arith.mulf %210, %214 : vector<8x128xf32>
      %216 = arith.index_cast %c3_i32 : i32 to index
      %c0_67 = arith.constant 0 : index
      %c0_68 = arith.constant 0 : index
      %217 = vector.load %arg10[%216, %c0_67, %c0_68] : memref<8x8x128xf32, #tpu.memory_space<vmem>>, vector<1x8x128xf32>
      %218 = vector.shape_cast %217 : vector<1x8x128xf32> to vector<8x128xf32>
      %219 = vector.shape_cast %215 : vector<8x128xf32> to vector<1x8x128xf32>
      tpu.vector_store %arg10[%216, %c0_67, %c0_68], %219 {strides = array<i32>} : memref<8x8x128xf32, #tpu.memory_space<vmem>>, vector<1x8x128xf32>,
      %220 = vector.broadcast %213 : vector<8x1xf32> to vector<8x128xf32>
      %221 = arith.mulf %210, %220 : vector<8x128xf32>
      %cst_69 = arith.constant 1.000000e+00 : f32
      %222 = vector.broadcast %cst_69 : f32 to vector<8x1xf32>
      %223 = arith.subf %222, %213 : vector<8x1xf32>
      %224 = vector.broadcast %223 : vector<8x1xf32> to vector<8x128xf32>
      %225 = arith.mulf %178, %224 : vector<8x128xf32>
      %226 = arith.addf %221, %225 : vector<8x128xf32>
      %c4_i32 = arith.constant 4 : i32
      %227 = arith.index_cast %c4_i32 : i32 to index
      %c0_70 = arith.constant 0 : index
      %c0_71 = arith.constant 0 : index
      %228 = vector.load %arg13[%227, %c0_70, %c0_71] : memref<8x8x384xf32, #tpu.memory_space<vmem>>, vector<1x8x384xf32>
      %229 = vector.shape_cast %228 : vector<1x8x384xf32> to vector<8x384xf32>
      %cst_72 = arith.constant dense<0.000000e+00> : vector<8x384xf32>
      %230 = tpu.matmul %226, %32, %cst_72 {dimension_numbers = #tpu.dot_dimension_numbers<[1], [0], [0], [1], [0, 0, 1, 1], [], []>} : vector<8x128xf32>, vector<128x384xf32>, vector<8x384xf32> -> vector<8x384xf32>
      %231 = vector.extract_strided_slice %229 {offsets = [0, 0], sizes = [8, 128], strides = [1, 1]} : vector<8x384xf32> to vector<8x128xf32>
      %232 = vector.extract_strided_slice %230 {offsets = [0, 0], sizes = [8, 128], strides = [1, 1]} : vector<8x384xf32> to vector<8x128xf32>
      %233 = arith.addf %231, %232 : vector<8x128xf32>
      %234 = arith.negf %233 : vector<8x128xf32>
      %235 = math.exp %234 : vector<8x128xf32>
      %cst_73 = arith.constant 1.000000e+00 : f32
      %236 = vector.broadcast %cst_73 : f32 to vector<8x128xf32>
      %237 = arith.addf %236, %235 : vector<8x128xf32>
      %238 = arith.divf %236, %237 : vector<8x128xf32>
      %239 = vector.extract_strided_slice %229 {offsets = [0, 128], sizes = [8, 128], strides = [1, 1]} : vector<8x384xf32> to vector<8x128xf32>
      %240 = vector.extract_strided_slice %230 {offsets = [0, 128], sizes = [8, 128], strides = [1, 1]} : vector<8x384xf32> to vector<8x128xf32>
      %241 = arith.addf %239, %240 : vector<8x128xf32>
      %242 = arith.negf %241 : vector<8x128xf32>
      %243 = math.exp %242 : vector<8x128xf32>
      %cst_74 = arith.constant 1.000000e+00 : f32
      %244 = vector.broadcast %cst_74 : f32 to vector<8x128xf32>
      %245 = arith.addf %244, %243 : vector<8x128xf32>
      %246 = arith.divf %244, %245 : vector<8x128xf32>
      %247 = vector.extract_strided_slice %229 {offsets = [0, 256], sizes = [8, 128], strides = [1, 1]} : vector<8x384xf32> to vector<8x128xf32>
      %248 = vector.extract_strided_slice %230 {offsets = [0, 256], sizes = [8, 128], strides = [1, 1]} : vector<8x384xf32> to vector<8x128xf32>
      %249 = vector.broadcast %33 : vector<1x128xf32> to vector<8x128xf32>
      %250 = arith.addf %248, %249 : vector<8x128xf32>
      %251 = arith.mulf %238, %250 : vector<8x128xf32>
      %252 = arith.addf %247, %251 : vector<8x128xf32>
      %253 = math.tanh %252 : vector<8x128xf32>
      %cst_75 = arith.constant 1.000000e+00 : f32
      %254 = vector.broadcast %cst_75 : f32 to vector<8x128xf32>
      %255 = arith.subf %254, %246 : vector<8x128xf32>
      %256 = arith.mulf %255, %253 : vector<8x128xf32>
      %257 = arith.mulf %246, %226 : vector<8x128xf32>
      %258 = arith.addf %256, %257 : vector<8x128xf32>
      %259 = arith.index_cast %c4_i32 : i32 to index
      %c0_76 = arith.constant 0 : index
      %c0_77 = arith.constant 0 : index
      %260 = vector.load %arg14[%259, %c0_76, %c0_77] : memref<8x8x1xf32, #tpu.memory_space<vmem>>, vector<1x8x1xf32>
      %261 = vector.shape_cast %260 : vector<1x8x1xf32> to vector<8x1xf32>
      %262 = vector.broadcast %261 : vector<8x1xf32> to vector<8x128xf32>
      %263 = arith.mulf %258, %262 : vector<8x128xf32>
      %264 = arith.index_cast %c4_i32 : i32 to index
      %c0_78 = arith.constant 0 : index
      %c0_79 = arith.constant 0 : index
      %265 = vector.load %arg10[%264, %c0_78, %c0_79] : memref<8x8x128xf32, #tpu.memory_space<vmem>>, vector<1x8x128xf32>
      %266 = vector.shape_cast %265 : vector<1x8x128xf32> to vector<8x128xf32>
      %267 = vector.shape_cast %263 : vector<8x128xf32> to vector<1x8x128xf32>
      tpu.vector_store %arg10[%264, %c0_78, %c0_79], %267 {strides = array<i32>} : memref<8x8x128xf32, #tpu.memory_space<vmem>>, vector<1x8x128xf32>,
      %268 = vector.broadcast %261 : vector<8x1xf32> to vector<8x128xf32>
      %269 = arith.mulf %258, %268 : vector<8x128xf32>
      %cst_80 = arith.constant 1.000000e+00 : f32
      %270 = vector.broadcast %cst_80 : f32 to vector<8x1xf32>
      %271 = arith.subf %270, %261 : vector<8x1xf32>
      %272 = vector.broadcast %271 : vector<8x1xf32> to vector<8x128xf32>
      %273 = arith.mulf %226, %272 : vector<8x128xf32>
      %274 = arith.addf %269, %273 : vector<8x128xf32>
      %c5_i32 = arith.constant 5 : i32
      %275 = arith.index_cast %c5_i32 : i32 to index
      %c0_81 = arith.constant 0 : index
      %c0_82 = arith.constant 0 : index
      %276 = vector.load %arg13[%275, %c0_81, %c0_82] : memref<8x8x384xf32, #tpu.memory_space<vmem>>, vector<1x8x384xf32>
      %277 = vector.shape_cast %276 : vector<1x8x384xf32> to vector<8x384xf32>
      %cst_83 = arith.constant dense<0.000000e+00> : vector<8x384xf32>
      %278 = tpu.matmul %274, %32, %cst_83 {dimension_numbers = #tpu.dot_dimension_numbers<[1], [0], [0], [1], [0, 0, 1, 1], [], []>} : vector<8x128xf32>, vector<128x384xf32>, vector<8x384xf32> -> vector<8x384xf32>
      %279 = vector.extract_strided_slice %277 {offsets = [0, 0], sizes = [8, 128], strides = [1, 1]} : vector<8x384xf32> to vector<8x128xf32>
      %280 = vector.extract_strided_slice %278 {offsets = [0, 0], sizes = [8, 128], strides = [1, 1]} : vector<8x384xf32> to vector<8x128xf32>
      %281 = arith.addf %279, %280 : vector<8x128xf32>
      %282 = arith.negf %281 : vector<8x128xf32>
      %283 = math.exp %282 : vector<8x128xf32>
      %cst_84 = arith.constant 1.000000e+00 : f32
      %284 = vector.broadcast %cst_84 : f32 to vector<8x128xf32>
      %285 = arith.addf %284, %283 : vector<8x128xf32>
      %286 = arith.divf %284, %285 : vector<8x128xf32>
      %287 = vector.extract_strided_slice %277 {offsets = [0, 128], sizes = [8, 128], strides = [1, 1]} : vector<8x384xf32> to vector<8x128xf32>
      %288 = vector.extract_strided_slice %278 {offsets = [0, 128], sizes = [8, 128], strides = [1, 1]} : vector<8x384xf32> to vector<8x128xf32>
      %289 = arith.addf %287, %288 : vector<8x128xf32>
      %290 = arith.negf %289 : vector<8x128xf32>
      %291 = math.exp %290 : vector<8x128xf32>
      %cst_85 = arith.constant 1.000000e+00 : f32
      %292 = vector.broadcast %cst_85 : f32 to vector<8x128xf32>
      %293 = arith.addf %292, %291 : vector<8x128xf32>
      %294 = arith.divf %292, %293 : vector<8x128xf32>
      %295 = vector.extract_strided_slice %277 {offsets = [0, 256], sizes = [8, 128], strides = [1, 1]} : vector<8x384xf32> to vector<8x128xf32>
      %296 = vector.extract_strided_slice %278 {offsets = [0, 256], sizes = [8, 128], strides = [1, 1]} : vector<8x384xf32> to vector<8x128xf32>
      %297 = vector.broadcast %33 : vector<1x128xf32> to vector<8x128xf32>
      %298 = arith.addf %296, %297 : vector<8x128xf32>
      %299 = arith.mulf %286, %298 : vector<8x128xf32>
      %300 = arith.addf %295, %299 : vector<8x128xf32>
      %301 = math.tanh %300 : vector<8x128xf32>
      %cst_86 = arith.constant 1.000000e+00 : f32
      %302 = vector.broadcast %cst_86 : f32 to vector<8x128xf32>
      %303 = arith.subf %302, %294 : vector<8x128xf32>
      %304 = arith.mulf %303, %301 : vector<8x128xf32>
      %305 = arith.mulf %294, %274 : vector<8x128xf32>
      %306 = arith.addf %304, %305 : vector<8x128xf32>
      %307 = arith.index_cast %c5_i32 : i32 to index
      %c0_87 = arith.constant 0 : index
      %c0_88 = arith.constant 0 : index
      %308 = vector.load %arg14[%307, %c0_87, %c0_88] : memref<8x8x1xf32, #tpu.memory_space<vmem>>, vector<1x8x1xf32>
      %309 = vector.shape_cast %308 : vector<1x8x1xf32> to vector<8x1xf32>
      %310 = vector.broadcast %309 : vector<8x1xf32> to vector<8x128xf32>
      %311 = arith.mulf %306, %310 : vector<8x128xf32>
      %312 = arith.index_cast %c5_i32 : i32 to index
      %c0_89 = arith.constant 0 : index
      %c0_90 = arith.constant 0 : index
      %313 = vector.load %arg10[%312, %c0_89, %c0_90] : memref<8x8x128xf32, #tpu.memory_space<vmem>>, vector<1x8x128xf32>
      %314 = vector.shape_cast %313 : vector<1x8x128xf32> to vector<8x128xf32>
      %315 = vector.shape_cast %311 : vector<8x128xf32> to vector<1x8x128xf32>
      tpu.vector_store %arg10[%312, %c0_89, %c0_90], %315 {strides = array<i32>} : memref<8x8x128xf32, #tpu.memory_space<vmem>>, vector<1x8x128xf32>,
      %316 = vector.broadcast %309 : vector<8x1xf32> to vector<8x128xf32>
      %317 = arith.mulf %306, %316 : vector<8x128xf32>
      %cst_91 = arith.constant 1.000000e+00 : f32
      %318 = vector.broadcast %cst_91 : f32 to vector<8x1xf32>
      %319 = arith.subf %318, %309 : vector<8x1xf32>
      %320 = vector.broadcast %319 : vector<8x1xf32> to vector<8x128xf32>
      %321 = arith.mulf %274, %320 : vector<8x128xf32>
      %322 = arith.addf %317, %321 : vector<8x128xf32>
      %c6_i32 = arith.constant 6 : i32
      %323 = arith.index_cast %c6_i32 : i32 to index
      %c0_92 = arith.constant 0 : index
      %c0_93 = arith.constant 0 : index
      %324 = vector.load %arg13[%323, %c0_92, %c0_93] : memref<8x8x384xf32, #tpu.memory_space<vmem>>, vector<1x8x384xf32>
      %325 = vector.shape_cast %324 : vector<1x8x384xf32> to vector<8x384xf32>
      %cst_94 = arith.constant dense<0.000000e+00> : vector<8x384xf32>
      %326 = tpu.matmul %322, %32, %cst_94 {dimension_numbers = #tpu.dot_dimension_numbers<[1], [0], [0], [1], [0, 0, 1, 1], [], []>} : vector<8x128xf32>, vector<128x384xf32>, vector<8x384xf32> -> vector<8x384xf32>
      %327 = vector.extract_strided_slice %325 {offsets = [0, 0], sizes = [8, 128], strides = [1, 1]} : vector<8x384xf32> to vector<8x128xf32>
      %328 = vector.extract_strided_slice %326 {offsets = [0, 0], sizes = [8, 128], strides = [1, 1]} : vector<8x384xf32> to vector<8x128xf32>
      %329 = arith.addf %327, %328 : vector<8x128xf32>
      %330 = arith.negf %329 : vector<8x128xf32>
      %331 = math.exp %330 : vector<8x128xf32>
      %cst_95 = arith.constant 1.000000e+00 : f32
      %332 = vector.broadcast %cst_95 : f32 to vector<8x128xf32>
      %333 = arith.addf %332, %331 : vector<8x128xf32>
      %334 = arith.divf %332, %333 : vector<8x128xf32>
      %335 = vector.extract_strided_slice %325 {offsets = [0, 128], sizes = [8, 128], strides = [1, 1]} : vector<8x384xf32> to vector<8x128xf32>
      %336 = vector.extract_strided_slice %326 {offsets = [0, 128], sizes = [8, 128], strides = [1, 1]} : vector<8x384xf32> to vector<8x128xf32>
      %337 = arith.addf %335, %336 : vector<8x128xf32>
      %338 = arith.negf %337 : vector<8x128xf32>
      %339 = math.exp %338 : vector<8x128xf32>
      %cst_96 = arith.constant 1.000000e+00 : f32
      %340 = vector.broadcast %cst_96 : f32 to vector<8x128xf32>
      %341 = arith.addf %340, %339 : vector<8x128xf32>
      %342 = arith.divf %340, %341 : vector<8x128xf32>
      %343 = vector.extract_strided_slice %325 {offsets = [0, 256], sizes = [8, 128], strides = [1, 1]} : vector<8x384xf32> to vector<8x128xf32>
      %344 = vector.extract_strided_slice %326 {offsets = [0, 256], sizes = [8, 128], strides = [1, 1]} : vector<8x384xf32> to vector<8x128xf32>
      %345 = vector.broadcast %33 : vector<1x128xf32> to vector<8x128xf32>
      %346 = arith.addf %344, %345 : vector<8x128xf32>
      %347 = arith.mulf %334, %346 : vector<8x128xf32>
      %348 = arith.addf %343, %347 : vector<8x128xf32>
      %349 = math.tanh %348 : vector<8x128xf32>
      %cst_97 = arith.constant 1.000000e+00 : f32
      %350 = vector.broadcast %cst_97 : f32 to vector<8x128xf32>
      %351 = arith.subf %350, %342 : vector<8x128xf32>
      %352 = arith.mulf %351, %349 : vector<8x128xf32>
      %353 = arith.mulf %342, %322 : vector<8x128xf32>
      %354 = arith.addf %352, %353 : vector<8x128xf32>
      %355 = arith.index_cast %c6_i32 : i32 to index
      %c0_98 = arith.constant 0 : index
      %c0_99 = arith.constant 0 : index
      %356 = vector.load %arg14[%355, %c0_98, %c0_99] : memref<8x8x1xf32, #tpu.memory_space<vmem>>, vector<1x8x1xf32>
      %357 = vector.shape_cast %356 : vector<1x8x1xf32> to vector<8x1xf32>
      %358 = vector.broadcast %357 : vector<8x1xf32> to vector<8x128xf32>
      %359 = arith.mulf %354, %358 : vector<8x128xf32>
      %360 = arith.index_cast %c6_i32 : i32 to index
      %c0_100 = arith.constant 0 : index
      %c0_101 = arith.constant 0 : index
      %361 = vector.load %arg10[%360, %c0_100, %c0_101] : memref<8x8x128xf32, #tpu.memory_space<vmem>>, vector<1x8x128xf32>
      %362 = vector.shape_cast %361 : vector<1x8x128xf32> to vector<8x128xf32>
      %363 = vector.shape_cast %359 : vector<8x128xf32> to vector<1x8x128xf32>
      tpu.vector_store %arg10[%360, %c0_100, %c0_101], %363 {strides = array<i32>} : memref<8x8x128xf32, #tpu.memory_space<vmem>>, vector<1x8x128xf32>,
      %364 = vector.broadcast %357 : vector<8x1xf32> to vector<8x128xf32>
      %365 = arith.mulf %354, %364 : vector<8x128xf32>
      %cst_102 = arith.constant 1.000000e+00 : f32
      %366 = vector.broadcast %cst_102 : f32 to vector<8x1xf32>
      %367 = arith.subf %366, %357 : vector<8x1xf32>
      %368 = vector.broadcast %367 : vector<8x1xf32> to vector<8x128xf32>
      %369 = arith.mulf %322, %368 : vector<8x128xf32>
      %370 = arith.addf %365, %369 : vector<8x128xf32>
      %c7_i32 = arith.constant 7 : i32
      %371 = arith.index_cast %c7_i32 : i32 to index
      %c0_103 = arith.constant 0 : index
      %c0_104 = arith.constant 0 : index
      %372 = vector.load %arg13[%371, %c0_103, %c0_104] : memref<8x8x384xf32, #tpu.memory_space<vmem>>, vector<1x8x384xf32>
      %373 = vector.shape_cast %372 : vector<1x8x384xf32> to vector<8x384xf32>
      %cst_105 = arith.constant dense<0.000000e+00> : vector<8x384xf32>
      %374 = tpu.matmul %370, %32, %cst_105 {dimension_numbers = #tpu.dot_dimension_numbers<[1], [0], [0], [1], [0, 0, 1, 1], [], []>} : vector<8x128xf32>, vector<128x384xf32>, vector<8x384xf32> -> vector<8x384xf32>
      %375 = vector.extract_strided_slice %373 {offsets = [0, 0], sizes = [8, 128], strides = [1, 1]} : vector<8x384xf32> to vector<8x128xf32>
      %376 = vector.extract_strided_slice %374 {offsets = [0, 0], sizes = [8, 128], strides = [1, 1]} : vector<8x384xf32> to vector<8x128xf32>
      %377 = arith.addf %375, %376 : vector<8x128xf32>
      %378 = arith.negf %377 : vector<8x128xf32>
      %379 = math.exp %378 : vector<8x128xf32>
      %cst_106 = arith.constant 1.000000e+00 : f32
      %380 = vector.broadcast %cst_106 : f32 to vector<8x128xf32>
      %381 = arith.addf %380, %379 : vector<8x128xf32>
      %382 = arith.divf %380, %381 : vector<8x128xf32>
      %383 = vector.extract_strided_slice %373 {offsets = [0, 128], sizes = [8, 128], strides = [1, 1]} : vector<8x384xf32> to vector<8x128xf32>
      %384 = vector.extract_strided_slice %374 {offsets = [0, 128], sizes = [8, 128], strides = [1, 1]} : vector<8x384xf32> to vector<8x128xf32>
      %385 = arith.addf %383, %384 : vector<8x128xf32>
      %386 = arith.negf %385 : vector<8x128xf32>
      %387 = math.exp %386 : vector<8x128xf32>
      %cst_107 = arith.constant 1.000000e+00 : f32
      %388 = vector.broadcast %cst_107 : f32 to vector<8x128xf32>
      %389 = arith.addf %388, %387 : vector<8x128xf32>
      %390 = arith.divf %388, %389 : vector<8x128xf32>
      %391 = vector.extract_strided_slice %373 {offsets = [0, 256], sizes = [8, 128], strides = [1, 1]} : vector<8x384xf32> to vector<8x128xf32>
      %392 = vector.extract_strided_slice %374 {offsets = [0, 256], sizes = [8, 128], strides = [1, 1]} : vector<8x384xf32> to vector<8x128xf32>
      %393 = vector.broadcast %33 : vector<1x128xf32> to vector<8x128xf32>
      %394 = arith.addf %392, %393 : vector<8x128xf32>
      %395 = arith.mulf %382, %394 : vector<8x128xf32>
      %396 = arith.addf %391, %395 : vector<8x128xf32>
      %397 = math.tanh %396 : vector<8x128xf32>
      %cst_108 = arith.constant 1.000000e+00 : f32
      %398 = vector.broadcast %cst_108 : f32 to vector<8x128xf32>
      %399 = arith.subf %398, %390 : vector<8x128xf32>
      %400 = arith.mulf %399, %397 : vector<8x128xf32>
      %401 = arith.mulf %390, %370 : vector<8x128xf32>
      %402 = arith.addf %400, %401 : vector<8x128xf32>
      %403 = arith.index_cast %c7_i32 : i32 to index
      %c0_109 = arith.constant 0 : index
      %c0_110 = arith.constant 0 : index
      %404 = vector.load %arg14[%403, %c0_109, %c0_110] : memref<8x8x1xf32, #tpu.memory_space<vmem>>, vector<1x8x1xf32>
      %405 = vector.shape_cast %404 : vector<1x8x1xf32> to vector<8x1xf32>
      %406 = vector.broadcast %405 : vector<8x1xf32> to vector<8x128xf32>
      %407 = arith.mulf %402, %406 : vector<8x128xf32>
      %408 = arith.index_cast %c7_i32 : i32 to index
      %c0_111 = arith.constant 0 : index
      %c0_112 = arith.constant 0 : index
      %409 = vector.load %arg10[%408, %c0_111, %c0_112] : memref<8x8x128xf32, #tpu.memory_space<vmem>>, vector<1x8x128xf32>
      %410 = vector.shape_cast %409 : vector<1x8x128xf32> to vector<8x128xf32>
      %411 = vector.shape_cast %407 : vector<8x128xf32> to vector<1x8x128xf32>
      tpu.vector_store %arg10[%408, %c0_111, %c0_112], %411 {strides = array<i32>} : memref<8x8x128xf32, #tpu.memory_space<vmem>>, vector<1x8x128xf32>,
      %412 = vector.broadcast %405 : vector<8x1xf32> to vector<8x128xf32>
      %413 = arith.mulf %402, %412 : vector<8x128xf32>
      %cst_113 = arith.constant 1.000000e+00 : f32
      %414 = vector.broadcast %cst_113 : f32 to vector<8x1xf32>
      %415 = arith.subf %414, %405 : vector<8x1xf32>
      %416 = vector.broadcast %415 : vector<8x1xf32> to vector<8x128xf32>
      %417 = arith.mulf %370, %416 : vector<8x128xf32>
      %418 = arith.addf %413, %417 : vector<8x128xf32>
      %c8_i32_114 = arith.constant 8 : i32
      %c0_115 = arith.constant 0 : index
      %c0_116 = arith.constant 0 : index
      %419 = vector.load %arg12[%c0_115, %c0_116] : memref<8x128xf32, #tpu.memory_space<vmem>>, vector<8x128xf32>
      tpu.vector_store %arg12[%c0_115, %c0_116], %418 {strides = array<i32>} : memref<8x128xf32, #tpu.memory_space<vmem>>, vector<8x128xf32>,
      %c0_117 = arith.constant 0 : index
      %c0_118 = arith.constant 0 : index
      %420 = vector.load %arg11[%c0_117, %c0_118] : memref<8x128xf32, #tpu.memory_space<vmem>>, vector<8x128xf32>
      tpu.vector_store %arg11[%c0_117, %c0_118], %418 {strides = array<i32>} : memref<8x128xf32, #tpu.memory_space<vmem>>, vector<8x128xf32>,
    } else {
    }
    %true = arith.constant true
    %7 = arith.xori %4, %true : i1
    %8 = arith.extui %7 : i1 to i32
    %c0_i32_1 = arith.constant 0 : i32
    %9 = arith.cmpi ne, %8, %c0_i32_1 : i32
    scf.if %9 {
      %cst = arith.constant 0.000000e+00 : f32
      %10 = vector.broadcast %cst : f32 to vector<8x8x128xf32>
      %c0_2 = arith.constant 0 : index
      %c0_3 = arith.constant 0 : index
      %c0_4 = arith.constant 0 : index
      %11 = vector.load %arg10[%c0_2, %c0_3, %c0_4] : memref<8x8x128xf32, #tpu.memory_space<vmem>>, vector<8x8x128xf32>
      tpu.vector_store %arg10[%c0_2, %c0_3, %c0_4], %10 {strides = array<i32>} : memref<8x8x128xf32, #tpu.memory_space<vmem>>, vector<8x8x128xf32>,
    } else {
    }
    return
  }
  func.func @transform_0(%arg0: i32, %arg1: i32, %arg2: memref<1xi32, #tpu.memory_space<smem>>) -> (i32, i32, i32) {
    %c0_i32 = arith.constant 0 : i32
    %c0_i32_0 = arith.constant 0 : i32
    return %arg1, %arg0, %c0_i32 : i32, i32, i32
  }
  func.func @transform_1(%arg0: i32, %arg1: i32, %arg2: memref<1xi32, #tpu.memory_space<smem>>) -> (i32, i32) {
    %c0_i32 = arith.constant 0 : i32
    %c0_i32_0 = arith.constant 0 : i32
    return %arg0, %c0_i32 : i32, i32
  }
  func.func @transform_2(%arg0: i32, %arg1: i32, %arg2: memref<1xi32, #tpu.memory_space<smem>>) -> (i32, i32) {
    %c0_i32 = arith.constant 0 : i32
    %c0_i32_0 = arith.constant 0 : i32
    %c0_i32_1 = arith.constant 0 : i32
    return %c0_i32, %c0_i32_0 : i32, i32
  }
  func.func @transform_3(%arg0: i32, %arg1: i32, %arg2: memref<1xi32, #tpu.memory_space<smem>>) -> (i32, i32) {
    %c0_i32 = arith.constant 0 : i32
    %c0_i32_0 = arith.constant 0 : i32
    %c0_i32_1 = arith.constant 0 : i32
    return %c0_i32, %c0_i32_0 : i32, i32
  }
  func.func @transform_4(%arg0: i32, %arg1: i32, %arg2: memref<1xi32, #tpu.memory_space<smem>>) -> (i32, i32) {
    %c0_i32 = arith.constant 0 : i32
    %c0_i32_0 = arith.constant 0 : i32
    %c0_i32_1 = arith.constant 0 : i32
    return %c0_i32, %c0_i32_0 : i32, i32
  }
  func.func @transform_5(%arg0: i32, %arg1: i32, %arg2: memref<1xi32, #tpu.memory_space<smem>>) -> (i32, i32) {
    %c0_i32 = arith.constant 0 : i32
    %c0_i32_0 = arith.constant 0 : i32
    %c0_i32_1 = arith.constant 0 : i32
    return %c0_i32, %c0_i32_0 : i32, i32
  }
  func.func @transform_6(%arg0: i32, %arg1: i32, %arg2: memref<1xi32, #tpu.memory_space<smem>>) -> (i32, i32) {
    %c0_i32 = arith.constant 0 : i32
    %c0_i32_0 = arith.constant 0 : i32
    return %arg0, %c0_i32 : i32, i32
  }
  func.func @transform_7(%arg0: i32, %arg1: i32, %arg2: memref<1xi32, #tpu.memory_space<smem>>) -> (i32, i32, i32) {
    %c0_i32 = arith.constant 0 : i32
    %c0_i32_0 = arith.constant 0 : i32
    return %arg1, %arg0, %c0_i32 : i32, i32, i32
  }
  func.func @transform_8(%arg0: i32, %arg1: i32, %arg2: memref<1xi32, #tpu.memory_space<smem>>) -> (i32, i32) {
    %c0_i32 = arith.constant 0 : i32
    %c0_i32_0 = arith.constant 0 : i32
    return %arg0, %c0_i32 : i32, i32
  }
}

</mosaic_0001>

<bundles_post_ra>
// kernel: tpu_custom_call.1
= control target key start
LH: loop header
LB: loop body
LE: loop exit
PB: predicated region body
PF: predicated region fallthrough
CT: control target
= control target key end

     0   :  { %16 = vsyncpa [#allocation8], 0  ;;  %s3892_s0 = inlined_call_operand.<no memory space> [shape: s32[1], index: 0, kind: input, shape index: {}]   ;;  %s3893_s1 = inlined_call_operand.hbm [shape: f32[8,8,128], index: 1, kind: input, shape index: {}]   ;;  %s3894_s2 = inlined_call_operand.vmem [shape: f32[8,128], index: 2, kind: input, shape index: {}]   ;;  %s3895_s3 = inlined_call_operand.hbm [shape: f32[128,384], index: 3, kind: input, shape index: {}]   ;;  %s3896_s4 = inlined_call_operand.hbm [shape: f32[128,384], index: 4, kind: input, shape index: {}]   ;;  %s3897_s5 = inlined_call_operand.vmem [shape: f32[1,384], index: 5, kind: input, shape index: {}]   ;;  %s3898_s6 = inlined_call_operand.vmem [shape: f32[1,128], index: 6, kind: input, shape index: {}]   ;;  %s3899_s7 = inlined_call_operand.vmem [shape: s32[8,1], index: 7, kind: input, shape index: {}]   ;;  %s3900_s8 = inlined_call_operand.hbm [shape: f32[8,8,128], index: 8, kind: output, shape index: {0}]   ;;  %s3901_s9 = inlined_call_operand.hbm [shape: f32[8,128], index: 9, kind: output, shape index: {1}]  }
   0x1   :  { %17 = vsyncpa [#allocation11], 0 }
   0x2   :  { %18 = vsyncpa [#allocation9], 0 }
   0x3   :  { %19 = vsyncpa [#allocation15], 0  ;;  %s3296_s29 = smov [#allocation10]   ;;  %s3178_s12 = scalar_lea.hbm %s3895_s3, 6144 }
   0x4   :  { %s39_s30 = sshll.u32 %s3296_s29, 4  ;;  %p3179_p0 = scmp.ne.s32.totalorder %s3895_s3, %s3178_s12  ;;  %s40_s30 = int_to_ptr.vmem [resolvable:$true] %s39_s30 }
   0x5   :  { %p3182_p1 = scmp.lt.u32.totalorder %s3178_s12, %s3895_s3 }
   0x7   :  { %p3184_p2 = pnand %p3182_p1, %p3179_p0 }
   0x9   :  { %3187 = shalt.err (!%p3184_p2)
}
   0xa   :  { %s3188_s17 = scalar_lea.vmem %s40_s30, 6144  ;;  %p3193_p4 = scmp.lt.s32.totalorder %s40_s30, %s40_s30 }
   0xb   :  { %p3189_p3 = scmp.ne.s32.totalorder %s40_s30, %s3188_s17  ;;  %p3194_p5 = scmp.lt.s32.totalorder %s3188_s17, %s3188_s17 }
   0xd   :  { %p3195_p6 = por %p3194_p5, %p3193_p4 }
   0xf   :  { %p3196_p7 = pnand %p3195_p6, %p3189_p3 }
  0x11   :  { %3199 = shalt.err (!%p3196_p7)
}
  0x12   :  { %s3297_s18 = smov 384   ;;  %s3298_s19 = smov 24  }
  0x13   :  { %45 = dma.hbm_to_vmem [thread:$0]  %s3895_s3, 6144, %s40_s30, [#allocation11], %s3297_s18, %s3297_s18, %s3298_s19  }
  0x14   :  { %s3299_s22 = smov [#allocation7]   ;;  %s3200_s25 = scalar_lea.hbm %s3893_s1, 1024 }
  0x15   :  { %s25_s23 = sshll.u32 %s3299_s22, 4  ;;  %p3201_p8 = scmp.ne.s32.totalorder %s3893_s1, %s3200_s25  ;;  %s26_s23 = int_to_ptr.vmem [resolvable:$true] %s25_s23 }
  0x16   :  { %p3204_p9 = scmp.lt.u32.totalorder %s3200_s25, %s3893_s1 }
  0x18   :  { %p3206_p10 = pnand %p3204_p9, %p3201_p8 }
  0x1a   :  { %3209 = shalt.err (!%p3206_p10)
}
  0x1b   :  { %s3210_s10 = scalar_lea.vmem %s26_s23, 1024  ;;  %p3215_p12 = scmp.lt.s32.totalorder %s26_s23, %s26_s23 }
  0x1c   :  { %p3211_p11 = scmp.ne.s32.totalorder %s26_s23, %s3210_s10  ;;  %p3216_p13 = scmp.lt.s32.totalorder %s3210_s10, %s3210_s10 }
  0x1e   :  { %p3217_p0 = por %p3216_p13, %p3215_p12 }
  0x20   :  { %p3218_p1 = pnand %p3217_p0, %p3211_p11 }
  0x22   :  { %3221 = shalt.err (!%p3218_p1)
}
  0x23   :  { %s3300_s3 = smov 128   ;;  %s3301_s30 = smov 8  }
  0x24   :  { %31 = dma.hbm_to_vmem [thread:$0]  %s3893_s1, 1024, %s26_s23, [#allocation8], %s3300_s3, %s3300_s3, %s3301_s30  }
  0x25   :  { %s3302_s13 = smov [#allocation12]   ;;  %s3222_s17 = scalar_lea.hbm %s3896_s4, 6144 }
  0x26   :  { %s51_s14 = sshll.u32 %s3302_s13, 4  ;;  %p3223_p2 = scmp.ne.s32.totalorder %s3896_s4, %s3222_s17  ;;  %s52_s14 = int_to_ptr.vmem [resolvable:$true] %s51_s14 }
  0x27   :  { %p3226_p3 = scmp.lt.u32.totalorder %s3222_s17, %s3896_s4 }
  0x29   :  { %p3228_p4 = pnand %p3226_p3, %p3223_p2 }
  0x2b   :  { %3231 = shalt.err (!%p3228_p4)
}
  0x2c   :  { %s3232_s0 = scalar_lea.vmem %s52_s14, 6144  ;;  %p3237_p6 = scmp.lt.s32.totalorder %s52_s14, %s52_s14 }
  0x2d   :  { %p3233_p5 = scmp.ne.s32.totalorder %s52_s14, %s3232_s0  ;;  %p3238_p7 = scmp.lt.s32.totalorder %s3232_s0, %s3232_s0 }
  0x2f   :  { %p3239_p8 = por %p3238_p7, %p3237_p6 }
  0x31   :  { %p3240_p9 = pnand %p3239_p8, %p3233_p5 }
  0x33   :  { %3243 = shalt.err (!%p3240_p9)
}
  0x34   :  { %57 = dma.hbm_to_vmem [thread:$0]  %s3896_s4, 6144, %s52_s14, [#allocation11], %s3297_s18, %s3297_s18, %s3298_s19  }
  0x35   :  { %3288 = dma.done.wait [#allocation8], 1024  }
  0x36   :  { %3289 = vsyncadd [#allocation8], 4294966272 }
  0x37   :  { %3290 = dma.done.wait [#allocation11], 12288  }
  0x38   :  { %3291 = vsyncadd [#allocation11], 4294955008  ;;  %v3303_v0 = vmov 0.0   ;;  %v3304_v1 = vmov 0   ;;  %v137_v2 = vld [vmem:[#allocation10 + $0x8] sm:$0xff]  ;;  %v140_v3 = vld [vmem:[#allocation10 + $0x20] sm:$0xff] }
  0x39   :  { %265 = vmatprep.mubr.f32.mxu0 %v3303_v0  ;;  %3096 = vset.pattern.permute.xlu0 %v3304_v1  ;;  %v136_v4 = vld [vmem:[#allocation10] sm:$0xff]  ;;  %v2539_v5 = vpack.c.bf16 %v140_v3, %v137_v2  ;;  %v139_v6 = vld [vmem:[#allocation10 + $0x18] sm:$0xff]  ;;  %v146_v8 = vld [vmem:[#allocation10 + $0x50] sm:$0xff]  ;;  %vm119_vm0 = vcmask 7168   ;;  %vm3306_vm9 = vmmov 0   ;;  %s3308_s28 = smov [#allocation14]  }
  0x3a   :  { %3097 = vset.pattern.permute.xlu1 %v3304_v1  ;;  %v143_v7 = vld [vmem:[#allocation10 + $0x38] sm:$0xff]  ;;  %v2541_v9 = vpack.c.bf16 %v139_v6, %v136_v4  ;;  %v142_v11 = vld [vmem:[#allocation10 + $0x30] sm:$0xff]  ;;  %v145_v12 = vld [vmem:[#allocation10 + $0x48] sm:$0xff]  ;;  %s2007_s29 = sshll.u32 %s3308_s28, 4  ;;  %s2008_s29 = int_to_ptr.vmem [resolvable:$true] %s2007_s29 }
  0x3b   :  { %v2543_v10 = vpack.c.bf16 %v146_v8, %v143_v7  ;;  %v149_v13 = vld [vmem:[#allocation10 + $0x68] sm:$0xff]  ;;  %2540 = vmatprep.subr.bf16.mxu0 %v2539_v5  ;;  %v152_v14 = vld [vmem:[#allocation10 + $0x80] sm:$0xff]  ;;  %v2545_v15 = vpack.c.bf16 %v145_v12, %v142_v11  ;;  %v151_v18 = vld [vmem:[#allocation10 + $0x78] sm:$0xff] }
  0x3c   :  { %2542 = vmatpush1.bf16.msra.mxu0 %v2541_v9  ;;  %v2547_v16 = vpack.c.bf16 %v152_v14, %v149_v13  ;;  %v148_v17 = vld [vmem:[#allocation10 + $0x60] sm:$0xff]  ;;  %v155_v19 = vld [vmem:[#allocation10 + $0x98] sm:$0xff]  ;;  %v158_v20 = vld [vmem:[#allocation10 + $0xb0] sm:$0xff] }
  0x3d   :  { %2544 = vmatprep.subr.bf16.mxu0 %v2543_v10  ;;  %v2549_v21 = vpack.c.bf16 %v151_v18, %v148_v17  ;;  %v154_v22 = vld [vmem:[#allocation10 + $0x90] sm:$0xff]  ;;  %v2551_v23 = vpack.c.bf16 %v158_v20, %v155_v19  ;;  %v157_v24 = vld [vmem:[#allocation10 + $0xa8] sm:$0xff]  ;;  %v164_v28 = vld [vmem:[#allocation10 + $0xe0] sm:$0xff] }
  0x3e   :  { %v138_v25 = vld [vmem:[#allocation10 + $0x10] sm:$0xff]  ;;  %v141_v26 = vld [vmem:[#allocation10 + $0x28] sm:$0xff]  ;;  %v144_v30 = vld [vmem:[#allocation10 + $0x40] sm:$0xff]  ;;  %v2553_v32 = vpack.c.bf16 %v157_v24, %v154_v22 }
  0x3f   :  { %v161_v27 = vld [vmem:[#allocation10 + $0xc8] sm:$0xff]  ;;  %v2571_v29 = vpack.c.bf16 %v141_v26, %v138_v25  ;;  %v147_v31 = vld [vmem:[#allocation10 + $0x58] sm:$0xff]  ;;  %v160_v33 = vld [vmem:[#allocation10 + $0xc0] sm:$0xff] }
  0x40   :  { %2546 = vmatpush1.bf16.msra.mxu0 %v2545_v15  ;;  %v2575_v34 = vpack.c.bf16 %v147_v31, %v144_v30  ;;  %v2555_v35 = vpack.c.bf16 %v164_v28, %v161_v27  ;;  %v163_v36 = vld [vmem:[#allocation10 + $0xd8] sm:$0xff]  ;;  %v3405_v37 = vld [vmem:[#allocation7] sm:$0xff]  ;;  %v150_v38 = vld [vmem:[#allocation10 + $0x70] sm:$0xff] }
  0x41   :  { %2548 = vmatprep.subr.bf16.mxu0 %v2547_v16  ;;  %2572 = vmatprep.subr.bf16.mxu1 %v2571_v29  ;;  %v167_v39 = vld [vmem:[#allocation10 + $0xf8] sm:$0xff]  ;;  %v170_v40 = vld [vmem:[#allocation10 + $0x110] sm:$0xff]  ;;  %v153_v41 = vld [vmem:[#allocation10 + $0x88] sm:$0xff]  ;;  %v2557_v43 = vpack.c.bf16 %v163_v36, %v160_v33 }
  0x42   :  { %2574 = vmatpush3.bf16.msra.mxu1 %v2571_v29  ;;  %2247 = vmatprep.mubr.f32.mxu1 %v3405_v37  ;;  %v2579_v42 = vpack.c.bf16 %v153_v41, %v150_v38  ;;  %v156_v44 = vld [vmem:[#allocation10 + $0xa0] sm:$0xff]  ;;  %v159_v45 = vld [vmem:[#allocation10 + $0xb8] sm:$0xff]  ;;  %v2559_v46 = vpack.c.bf16 %v170_v40, %v167_v39  ;;  %v166_v47 = vld [vmem:[#allocation10 + $0xf0] sm:$0xff] }
  0x43   :  { %2576 = vmatprep.subr.bf16.mxu1 %v2575_v34  ;;  %v169_v48 = vld [vmem:[#allocation10 + $0x108] sm:$0xff]  ;;  %v176_v50 = vld [vmem:[#allocation10 + $0x140] sm:$0xff]  ;;  %v2583_v51 = vpack.c.bf16 %v159_v45, %v156_v44  ;;  %v162_v52 = vld [vmem:[#allocation10 + $0xd0] sm:$0xff] }
  0x44   :  { %2550 = vmatpush1.bf16.msra.mxu0 %v2549_v21  ;;  %v173_v49 = vld [vmem:[#allocation10 + $0x128] sm:$0xff]  ;;  %v2561_v54 = vpack.c.bf16 %v169_v48, %v166_v47  ;;  %v172_v56 = vld [vmem:[#allocation10 + $0x120] sm:$0xff]  ;;  %v175_v57 = vld [vmem:[#allocation10 + $0x138] sm:$0xff] }
  0x45   :  { %2552 = vmatprep.subr.bf16.mxu0 %v2551_v23  ;;  %v165_v53 = vld [vmem:[#allocation10 + $0xe8] sm:$0xff]  ;;  %v2563_v55 = vpack.c.bf16 %v176_v50, %v173_v49  ;;  %v179_v58 = vld [vmem:[#allocation10 + $0x158] sm:$0xff]  ;;  %v182_v59 = vld [vmem:[#allocation10 + $0x170] sm:$0xff]  ;;  %v2565_v63 = vpack.c.bf16 %v175_v57, %v172_v56  ;;  %v3305_v50 = vmov 0.0|0.0  }
  0x46   :  { %2578 = vmatpush3.bf16.msra.mxu1 %v2575_v34  ;;  %v2587_v60 = vpack.c.bf16 %v165_v53, %v162_v52  ;;  %v168_v61 = vld [vmem:[#allocation10 + $0x100] sm:$0xff]  ;;  %v171_v62 = vld [vmem:[#allocation10 + $0x118] sm:$0xff]  ;;  %v2567_v1 = vpack.c.bf16 %v182_v59, %v179_v58  ;;  %v178_v2 = vld [vmem:[#allocation10 + $0x150] sm:$0xff] }
  0x47   :  { %2580 = vmatprep.subr.bf16.mxu1 %v2579_v42  ;;  %v181_v3 = vld [vmem:[#allocation10 + $0x168] sm:$0xff]  ;;  %v447_v5 = vld [vmem:[#allocation12 + $0x20] sm:$0xff]  ;;  %v2591_v6 = vpack.c.bf16 %v171_v62, %v168_v61  ;;  %v174_v7 = vld [vmem:[#allocation10 + $0x130] sm:$0xff] }
  0x48   :  { %2554 = vmatpush1.bf16.msra.mxu0 %v2553_v32  ;;  %v444_v4 = vld [vmem:[#allocation12 + $0x8] sm:$0xff]  ;;  %v2569_v9 = vpack.c.bf16 %v181_v3, %v178_v2  ;;  %v443_v11 = vld [vmem:[#allocation12] sm:$0xff]  ;;  %v446_v12 = vld [vmem:[#allocation12 + $0x18] sm:$0xff] }
  0x49   :  { %2556 = vmatprep.subr.bf16.mxu0 %v2555_v35  ;;  %v177_v8 = vld [vmem:[#allocation10 + $0x148] sm:$0xff]  ;;  %v3408_v10 = vpack.c.bf16 %v447_v5, %v444_v4  ;;  %v450_v13 = vld [vmem:[#allocation12 + $0x38] sm:$0xff]  ;;  %v453_v14 = vld [vmem:[#allocation12 + $0x50] sm:$0xff]  ;;  %v3410_v19 = vpack.c.bf16 %v446_v12, %v443_v11 }
  0x4a   :  { %2582 = vmatpush3.bf16.msra.mxu1 %v2579_v42  ;;  %v2595_v15 = vpack.c.bf16 %v177_v8, %v174_v7  ;;  %v449_v16 = vld [vmem:[#allocation12 + $0x30] sm:$0xff]  ;;  %v180_v17 = vld [vmem:[#allocation10 + $0x160] sm:$0xff]  ;;  %v183_v18 = vld [vmem:[#allocation10 + $0x178] sm:$0xff]  ;;  %v3413_v23 = vpack.c.bf16 %v453_v14, %v450_v13 }
  0x4b   :  { %2584 = vmatprep.subr.bf16.mxu1 %v2583_v51  ;;  %v452_v20 = vld [vmem:[#allocation12 + $0x48] sm:$0xff]  ;;  %v459_v22 = vld [vmem:[#allocation12 + $0x80] sm:$0xff]  ;;  %v2599_v24 = vpack.c.bf16 %v183_v18, %v180_v17  ;;  %v458_v30 = vld [vmem:[#allocation12 + $0x78] sm:$0xff] }
  0x4c   :  { %2558 = vmatpush1.bf16.msra.mxu0 %v2557_v43  ;;  %v456_v21 = vld [vmem:[#allocation12 + $0x68] sm:$0xff]  ;;  %v3416_v25 = vpack.c.bf16 %v452_v20, %v449_v16  ;;  %v94_v27 = vld [vmem:[%s3899_s7] sm:$0xff]  ;;  %v462_v35 = vld [vmem:[#allocation12 + $0x98] sm:$0xff] }
  0x4d   :  { %2560 = vmatprep.subr.bf16.mxu0 %v2559_v46  ;;  %v3418_v26 = vpack.c.bf16 %v459_v22, %v456_v21  ;;  %v129_v28 = vld [vmem:[#allocation7 + $0x8] sm:$0xff]  ;;  %vm2022_vm1 = vcmp.gt.s32.totalorder %v94_v27, 0  ;;  %vm2024_vm2 = vcmp.gt.s32.totalorder %v94_v27, 2  ;;  %vm2025_vm3 = vcmp.gt.s32.totalorder %v94_v27, 3  ;;  %v455_v29 = vld [vmem:[#allocation12 + $0x60] sm:$0xff]  ;;  %v465_v36 = vld [vmem:[#allocation12 + $0xb0] sm:$0xff] }
  0x4e   :  { %2586 = vmatpush3.bf16.msra.mxu1 %v2583_v51  ;;  %vm2026_vm4 = vcmp.gt.s32.totalorder %v94_v27, 4  ;;  %v2030_v31 = vsel %vm2022_vm1, 1.0, %v3303_v0  ;;  %v2032_v32 = vsel %vm2024_vm2, 1.0, %v3303_v0  ;;  %v2033_v33 = vsel %vm2025_vm3, 1.0, %v3303_v0  ;;  %v448_v38 = vld [vmem:[#allocation12 + $0x28] sm:$0xff]  ;;  %v130_v43 = vld [vmem:[#allocation7 + $0x10] sm:$0xff] }
  0x4f   :  { %2588 = vmatprep.subr.bf16.mxu1 %v2587_v60  ;;  %v2034_v34 = vsel %vm2026_vm4, 1.0, %v3303_v0  ;;  %120 = vst.msk [vmem:[#allocation4] sm:$0xff] %vm119_vm0, %v2030_v31  ;;  %122 = vst.msk [vmem:[#allocation4 + $0x10] sm:$0xff] %vm119_vm0, %v2032_v32  ;;  %vm2027_vm5 = vcmp.gt.s32.totalorder %v94_v27, 5  ;;  %vm2028_vm6 = vcmp.gt.s32.totalorder %v94_v27, 6  ;;  %vm2029_vm7 = vcmp.gt.s32.totalorder %v94_v27, 7 }
  0x50   :  { %2562 = vmatpush1.bf16.msra.mxu0 %v2561_v54  ;;  %123 = vst.msk [vmem:[#allocation4 + $0x18] sm:$0xff] %vm119_vm0, %v2033_v33  ;;  %124 = vst.msk [vmem:[#allocation4 + $0x20] sm:$0xff] %vm119_vm0, %v2034_v34  ;;  %vm2023_vm8 = vcmp.gt.s32.totalorder %v94_v27, 1  ;;  %v2035_v39 = vsel %vm2027_vm5, 1.0, %v3303_v0  ;;  %v2036_v40 = vsel %vm2028_vm6, 1.0, %v3303_v0  ;;  %v2037_v41 = vsel %vm2029_vm7, 1.0, %v3303_v0 }
  0x51   :  { %2564 = vmatprep.subr.bf16.mxu0 %v2563_v55  ;;  %v2031_v42 = vsel %vm2023_vm8, 1.0, %v3303_v0  ;;  %v3440_v44 = vpack.c.bf16 %v458_v30, %v455_v29  ;;  %125 = vst.msk [vmem:[#allocation4 + $0x28] sm:$0xff] %vm119_vm0, %v2035_v39  ;;  %126 = vst.msk [vmem:[#allocation4 + $0x30] sm:$0xff] %vm119_vm0, %v2036_v40  ;;  %v3447_v45 = vpack.c.bf16 %v465_v36, %v462_v35  ;;  %v461_v46 = vld [vmem:[#allocation12 + $0x90] sm:$0xff]  ;;  %v464_v47 = vld [vmem:[#allocation12 + $0xa8] sm:$0xff] }
  0x52   :  { %2590 = vmatpush3.bf16.msra.mxu1 %v2587_v60  ;;  %127 = vst.msk [vmem:[#allocation4 + $0x38] sm:$0xff] %vm119_vm0, %v2037_v41  ;;  %121 = vst.msk [vmem:[#allocation4 + $0x8] sm:$0xff] %vm119_vm0, %v2031_v42  ;;  %v468_v48 = vld [vmem:[#allocation12 + $0xc8] sm:$0xff]  ;;  %v471_v49 = vld [vmem:[#allocation12 + $0xe0] sm:$0xff]  ;;  %v3454_v55 = vpack.c.bf16 %v464_v47, %v461_v46 }
  0x53   :  { %2592 = vmatprep.subr.bf16.mxu1 %v2591_v6  ;;  %v451_v52 = vld [vmem:[#allocation12 + $0x40] sm:$0xff]  ;;  %v454_v53 = vld [vmem:[#allocation12 + $0x58] sm:$0xff]  ;;  %v3457_v56 = vpack.c.bf16 %v471_v49, %v468_v48  ;;  %v477_v60 = vld [vmem:[#allocation12 + $0x110] sm:$0xff] }
  0x54   :  { %2566 = vmatpush1.bf16.msra.mxu0 %v2565_v63  ;;  %v131_v54 = vld [vmem:[#allocation7 + $0x18] sm:$0xff]  ;;  %v467_v57 = vld [vmem:[#allocation12 + $0xc0] sm:$0xff]  ;;  %v3460_v61 = vpack.c.bf16 %v454_v53, %v451_v52  ;;  %v457_v62 = vld [vmem:[#allocation12 + $0x70] sm:$0xff] }
  0x55   :  { %2568 = vmatprep.subr.bf16.mxu0 %v2567_v1  ;;  %v470_v58 = vld [vmem:[#allocation12 + $0xd8] sm:$0xff]  ;;  %v460_v63 = vld [vmem:[#allocation12 + $0x88] sm:$0xff]  ;;  %v132_v1 = vld [vmem:[#allocation7 + $0x20] sm:$0xff] }
  0x56   :  { %2594 = vmatpush3.bf16.msra.mxu1 %v2591_v6  ;;  %v474_v59 = vld [vmem:[#allocation12 + $0xf8] sm:$0xff]  ;;  %v3465_v2 = vpack.c.bf16 %v470_v58, %v467_v57  ;;  %v473_v4 = vld [vmem:[#allocation12 + $0xf0] sm:$0xff]  ;;  %v476_v5 = vld [vmem:[#allocation12 + $0x108] sm:$0xff]  ;;  %v3471_v8 = vpack.c.bf16 %v460_v63, %v457_v62 }
  0x57   :  { %2596 = vmatprep.subr.bf16.mxu1 %v2595_v15  ;;  %v3468_v3 = vpack.c.bf16 %v477_v60, %v474_v59  ;;  %v480_v6 = vld [vmem:[#allocation12 + $0x128] sm:$0xff]  ;;  %v483_v7 = vld [vmem:[#allocation12 + $0x140] sm:$0xff]  ;;  %v466_v11 = vld [vmem:[#allocation12 + $0xb8] sm:$0xff]  ;;  %v3476_v13 = vpack.c.bf16 %v476_v5, %v473_v4 }
  0x58   :  { %2570 = vmatpush1.bf16.msra.mxu0 %v2569_v9  ;;  %v463_v9 = vld [vmem:[#allocation12 + $0xa0] sm:$0xff]  ;;  %v133_v12 = vld [vmem:[#allocation7 + $0x28] sm:$0xff]  ;;  %v134_v14 = vld [vmem:[#allocation7 + $0x30] sm:$0xff] }
  0x59   :  { %2604 = vmatprep.subr.bf16.mxu0 %v3408_v10  ;;  %v479_v16 = vld [vmem:[#allocation12 + $0x120] sm:$0xff]  ;;  %v482_v17 = vld [vmem:[#allocation12 + $0x138] sm:$0xff]  ;;  %v489_v20 = vld [vmem:[#allocation12 + $0x170] sm:$0xff]  ;;  %v3482_v21 = vpack.c.bf16 %v466_v11, %v463_v9 }
  0x5a   :  { %2598 = vmatpush3.bf16.msra.mxu1 %v2595_v15  ;;  %v3479_v15 = vpack.c.bf16 %v483_v7, %v480_v6  ;;  %v486_v18 = vld [vmem:[#allocation12 + $0x158] sm:$0xff]  ;;  %v469_v22 = vld [vmem:[#allocation12 + $0xd0] sm:$0xff]  ;;  %v3487_v27 = vpack.c.bf16 %v482_v17, %v479_v16  ;;  %v488_v31 = vld [vmem:[#allocation12 + $0x168] sm:$0xff]  ;;  %v186_v6 = vlaneseq }
  0x5b   :  { %266 = vmatmul.mubr.f32.vlgmr.msra.gmra.mrb[0].mxu0 %v3405_v37  ;;  %2600 = vmatprep.subr.bf16.mxu1 %v2599_v24  ;;  %v445_v37 = vld [vmem:[#allocation12 + $0x10] sm:$0xff]  ;;  %v3490_v29 = vpack.c.bf16 %v489_v20, %v486_v18  ;;  %v665_v33 = vld [vmem:[#allocation4] sm:$0xff]  ;;  %v478_v35 = vld [vmem:[#allocation12 + $0x118] sm:$0xff] }
  0x5c   :  { %2606 = vmatpush1.bf16.msra.mxu0 %v3410_v19  ;;  %271 = vmatprep.mubr.f32.mxu0 %v3303_v0  ;;  %v3450_v51 = vpack.c.bf16 %v448_v38, %v445_v37  ;;  %v485_v30 = vld [vmem:[#allocation12 + $0x150] sm:$0xff]  ;;  %v475_v34 = vld [vmem:[#allocation12 + $0x100] sm:$0xff]  ;;  %v849_v36 = vld [vmem:[#allocation4 + $0x8] sm:$0xff]  ;;  %v673_v38 = vsub.f32 1.0, %v665_v33  ;;  %v187_v7 = vshrl.u32 %v186_v6, 7 }
  0x5d   :  { %2608 = vmatprep.subr.bf16.mxu0 %v3413_v23  ;;  %v3500_v37 = vpack.c.bf16 %v488_v31, %v485_v30  ;;  %668 = vperm.xlu0 %3096, %v665_v33   ;;  %v3504_v39 = vpack.c.bf16 %v478_v35, %v475_v34  ;;  %v858_v40 = vsub.f32 1.0, %v849_v36  ;;  %v481_v41 = vld [vmem:[#allocation12 + $0x130] sm:$0xff]  ;;  %v484_v42 = vld [vmem:[#allocation12 + $0x148] sm:$0xff]  ;;  %v487_v49 = vld [vmem:[#allocation12 + $0x160] sm:$0xff] }
  0x5e   :  { %2602 = vmatpush3.bf16.msra.mxu1 %v2599_v24  ;;  %v472_v24 = vld [vmem:[#allocation12 + $0xe8] sm:$0xff]  ;;  %852 = vperm.xlu1 %3097, %v849_v36   ;;  %v1034_v46 = vld [vmem:[#allocation4 + $0x10] sm:$0xff]  ;;  %v3516_v47 = vpack.c.bf16 %v484_v42, %v481_v41  ;;  %v490_v52 = vld [vmem:[#allocation12 + $0x178] sm:$0xff]  ;;  %v196_v9 = vsub.s32 2, %v187_v7  ;;  %v192_v41 = vsub.s32 1, %v187_v7 }
  0x5f   :  { %272 = vmatmul.mubr.f32.gmra.mrb[2].mxu0 %v129_v28  ;;  %2635 = vmatprep.subr.bf16.mxu1 %v3305_v50  ;;  %v3493_v32 = vpack.c.bf16 %v472_v24, %v469_v22  ;;  %v1043_v48 = vsub.f32 1.0, %v1034_v46  ;;  %v1219_v53 = vld [vmem:[#allocation4 + $0x18] sm:$0xff]  ;;  %v1404_v58 = vld [vmem:[#allocation4 + $0x20] sm:$0xff]  ;;  %v1589_v60 = vld [vmem:[#allocation4 + $0x28] sm:$0xff] }
  0x60   :  { %2610 = vmatpush1.bf16.msra.mxu0 %v3416_v25  ;;  %277 = vmatprep.mubr.f32.mxu0 %v3303_v0  ;;  %v1228_v57 = vsub.f32 1.0, %v1219_v53  ;;  %v1413_v59 = vsub.f32 1.0, %v1404_v58  ;;  %v1598_v62 = vsub.f32 1.0, %v1589_v60  ;;  %v1774_v63 = vld [vmem:[#allocation4 + $0x30] sm:$0xff]  ;;  %v1959_v4 = vld [vmem:[#allocation4 + $0x38] sm:$0xff] }
  0x61   :  { %2612 = vmatprep.subr.bf16.mxu0 %v3418_v26  ;;  %2248 = vmatmul.mubr.f32.vlgmr.msra.gmra.mrb[0].mxu1 %v129_v28  ;;  %v135_v28 = vld [vmem:[#allocation7 + $0x38] sm:$0xff]  ;;  %v1968_v5 = vsub.f32 1.0, %v1959_v4  ;;  %v184_v11 = vld [vmem:[%s3897_s5] sm:$0x7] }
  0x62   :  { %2637 = vmatpush3.bf16.msra.mxu1 %v3450_v51  ;;  %2250 = vmatprep.mubr.f32.mxu1 %v130_v43 }
  0x63   :  { %278 = vmatmul.mubr.f32.gmra.mrb[4].mxu0 %v130_v43  ;;  %2638 = vmatprep.subr.bf16.mxu1 %v3305_v50  ;;  %v3512_v43 = vld [vmem:[%s3894_s2] sm:$0xff] }
  0x64   :  { %2614 = vmatpush1.bf16.msra.mxu0 %v3440_v44  ;;  %283 = vmatprep.mubr.f32.mxu0 %v3303_v0 }
  0x65   :  { %2616 = vmatprep.subr.bf16.mxu0 %v3447_v45  ;;  %2251 = vmatmul.mubr.f32.gmra.mrb[2].mxu1 %v131_v54 }
  0x66   :  { %2640 = vmatpush3.bf16.msra.mxu1 %v3460_v61  ;;  %2253 = vmatprep.mubr.f32.mxu1 %v132_v1 }
  0x67   :  { %284 = vmatmul.mubr.f32.gmra.mrb[6].mxu0 %v131_v54  ;;  %2641 = vmatprep.subr.bf16.mxu1 %v3305_v50  ;;  %v3524_v54 = vpack.c.bf16 %v490_v52, %v487_v49 }
  0x68   :  { %2618 = vmatpush1.bf16.msra.mxu0 %v3454_v55  ;;  %289 = vmatprep.mubr.f32.mxu0 %v3303_v0 }
  0x69   :  { %2620 = vmatprep.subr.bf16.mxu0 %v3457_v56  ;;  %2254 = vmatmul.mubr.f32.gmra.mrb[4].mxu1 %v133_v12 }
  0x6a   :  { %2643 = vmatpush3.bf16.msra.mxu1 %v3471_v8  ;;  %2256 = vmatprep.mubr.f32.mxu1 %v134_v14 }
  0x6b   :  { %290 = vmatmul.mubr.f32.gmra.mrb[8].mxu0 %v132_v1  ;;  %2644 = vmatprep.subr.bf16.mxu1 %v3305_v50  ;;  %v1783_v1 = vsub.f32 1.0, %v1774_v63 }
  0x6c   :  { %2622 = vmatpush1.bf16.msra.mxu0 %v3465_v2  ;;  %295 = vmatprep.mubr.f32.mxu0 %v3303_v0 }
  0x6d   :  { %2624 = vmatprep.subr.bf16.mxu0 %v3468_v3  ;;  %2257 = vmatmul.mubr.f32.gmra.mrb[6].mxu1 %v135_v28 }
  0x6e   :  { %2646 = vmatpush3.bf16.msra.mxu1 %v3482_v21  ;;  %2291 = vmatprep.mubr.msk.f32.mxu1 %vm3306_vm9, %v3303_v0 }
  0x6f   :  { %296 = vmatmul.mubr.f32.gmra.mrb[10].mxu0 %v133_v12  ;;  %2647 = vmatprep.subr.bf16.mxu1 %v3305_v50  ;;  %v197_v12 = vrot.slane %v184_v11, %v196_v9 }
  0x70   :  { %2626 = vmatpush1.bf16.msra.mxu0 %v3476_v13  ;;  %301 = vmatprep.mubr.f32.mxu0 %v3303_v0 }
  0x71   :  { %2628 = vmatprep.subr.bf16.mxu0 %v3479_v15  ;;  %676 = vperm.xlu0 %3096, %v673_v38  }
  0x72   :  { %2649 = vmatpush3.bf16.msra.mxu1 %v3493_v32  ;;  %861 = vperm.xlu1 %3097, %v858_v40   ;;  %v188_v40 = vsub.s32 0, %v187_v7 }
  0x73   :  { %302 = vmatmul.mubr.f32.gmra.mrb[12].mxu0 %v134_v14  ;;  %2650 = vmatprep.subr.bf16.mxu1 %v3305_v50 }
  0x74   :  { %2630 = vmatpush1.bf16.msra.mxu0 %v3487_v27  ;;  %307 = vmatprep.mubr.f32.mxu0 %v3303_v0  ;;  %v3579_v42 = vrot.slane %v184_v11, %v188_v40 }
  0x75   :  { %2632 = vmatprep.subr.bf16.mxu0 %v3490_v29  ;;  %1037 = vperm.xlu0 %3096, %v1034_v46  }
  0x76   :  { %2652 = vmatpush3.bf16.msra.mxu1 %v3504_v39  ;;  %1046 = vperm.xlu1 %3097, %v1043_v48   ;;  %v3581_v48 = vrot.slane %v184_v11, %v192_v41 }
  0x77   :  { %308 = vmatmul.mubr.f32.gmra.mrb[14].mxu0 %v135_v28  ;;  %2653 = vmatprep.subr.bf16.mxu1 %v3305_v50 }
  0x78   :  { %2634 = vmatpush1.bf16.msra.mxu0 %v3500_v37  ;;  %560 = vmatprep.mubr.f32.mxu0 %v3303_v0 }
  0x79   :  { %2660 = vmatprep.subr.bf16.mxu0 %v3408_v10  ;;  %1222 = vperm.xlu0 %3096, %v1219_v53  }
  0x7a   :  { %2655 = vmatpush3.bf16.msra.mxu1 %v3516_v47  ;;  %1231 = vperm.xlu1 %3097, %v1228_v57  }
  0x7b   :  { %561 = vmatmul.mubr.f32.vlgmr.msra.gmra.mrb[0].mxu0 %v3512_v43  ;;  %2656 = vmatprep.subr.bf16.mxu1 %v3305_v50 }
  0x7c   :  { %2662 = vmatpush1.bf16.msra.mxu0 %v3410_v19  ;;  %749 = vmatprep.mubr.f32.mxu0 %v3303_v0 }
  0x7d   :  { %2664 = vmatprep.subr.bf16.mxu0 %v3413_v23  ;;  %1407 = vperm.xlu0 %3096, %v1404_v58  }
  0x7e   :  { %2658 = vmatpush3.bf16.msra.mxu1 %v3524_v54  ;;  %1416 = vperm.xlu1 %3097, %v1413_v59  }
  0x7f   :  { %2691 = vmatprep.subr.bf16.mxu1 %v3305_v50 }
  0x80   :  { %2666 = vmatpush1.bf16.msra.mxu0 %v3416_v25 }
  0x81   :  { %2668 = vmatprep.subr.bf16.mxu0 %v3418_v26  ;;  %2292 = vmatmul.mubr.f32.vlgmr.msra.gmra.mrb[8].mxu1 %v3512_v43 }
  0x82   :  { %2693 = vmatpush3.bf16.msra.mxu1 %v3450_v51  ;;  %2326 = vmatprep.mubr.msk.f32.mxu1 %vm3306_vm9, %v3303_v0 }
  0x83   :  { %2694 = vmatprep.subr.bf16.mxu1 %v3305_v50  ;;  %1592 = vperm.xlu0 %3096, %v1589_v60  }
  0x84   :  { %2670 = vmatpush1.bf16.msra.mxu0 %v3440_v44  ;;  %1601 = vperm.xlu1 %3097, %v1598_v62  }
  0x85   :  { %2672 = vmatprep.subr.bf16.mxu0 %v3447_v45 }
  0x86   :  { %2696 = vmatpush3.bf16.msra.mxu1 %v3460_v61 }
  0x87   :  { %2697 = vmatprep.subr.bf16.mxu1 %v3305_v50  ;;  %1777 = vperm.xlu0 %3096, %v1774_v63  }
  0x88   :  { %2674 = vmatpush1.bf16.msra.mxu0 %v3454_v55  ;;  %1786 = vperm.xlu1 %3097, %v1783_v1  }
  0x89   :  { %2676 = vmatprep.subr.bf16.mxu0 %v3457_v56 }
  0x8a   :  { %2699 = vmatpush3.bf16.msra.mxu1 %v3471_v8 }
  0x8b   :  { %2700 = vmatprep.subr.bf16.mxu1 %v3305_v50  ;;  %1962 = vperm.xlu0 %3096, %v1959_v4   ;;  %v3588_v4 = vld [vmem:[%s3898_s6] ss:$0 sm:$0xff]  ;;  %s3307_s6 = smov [#allocation13]  }
  0x8c   :  { %2678 = vmatpush1.bf16.msra.mxu0 %v3465_v2  ;;  %1971 = vperm.xlu1 %3097, %v1968_v5   ;;  %s1994_s27 = sshll.u32 %s3307_s6, 4  ;;  %s1995_s27 = int_to_ptr.vmem [resolvable:$true] %s1994_s27 }
  0x8d   :  { %2680 = vmatprep.subr.bf16.mxu0 %v3468_v3  ;;  %s3244_s10 = scalar_lea.vmem %s1995_s27, 1024  ;;  %p3249_p11 = scmp.lt.s32.totalorder %s1995_s27, %s1995_s27 }
  0x8e   :  { %2702 = vmatpush3.bf16.msra.mxu1 %v3482_v21  ;;  %p3245_p10 = scmp.ne.s32.totalorder %s1995_s27, %s3244_s10  ;;  %p3250_p12 = scmp.lt.s32.totalorder %s3244_s10, %s3244_s10 }
  0x8f   :  { %2703 = vmatprep.subr.bf16.mxu1 %v3305_v50 }
  0x90   :  { %2682 = vmatpush1.bf16.msra.mxu0 %v3476_v13  ;;  %p3251_p13 = por %p3250_p12, %p3249_p11 }
  0x91   :  { %2684 = vmatprep.subr.bf16.mxu0 %v3479_v15 }
  0x92   :  { %2705 = vmatpush3.bf16.msra.mxu1 %v3493_v32  ;;  %p3252_p0 = pnand %p3251_p13, %p3245_p10 }
  0x93   :  { %2706 = vmatprep.subr.bf16.mxu1 %v3305_v50 }
  0x94   :  { %2686 = vmatpush1.bf16.msra.mxu0 %v3487_v27 }
  0x95   :  { %2688 = vmatprep.subr.bf16.mxu0 %v3490_v29 }
  0x96   :  { %2708 = vmatpush3.bf16.msra.mxu1 %v3504_v39 }
  0x97   :  { %2709 = vmatprep.subr.bf16.mxu1 %v3305_v50 }
  0x98   :  { %2690 = vmatpush1.bf16.msra.mxu0 %v3500_v37 }
  0x99   :  { %2716 = vmatprep.subr.bf16.mxu0 %v3408_v10 }
  0x9a   :  { %2711 = vmatpush3.bf16.msra.mxu1 %v3516_v47 }
  0x9b   :  { %2712 = vmatprep.subr.bf16.mxu1 %v3305_v50 }
  0x9e   :  { %2714 = vmatpush3.bf16.msra.mxu1 %v3524_v54 }
  0x9f   :  { %2747 = vmatprep.subr.bf16.mxu1 %v3305_v50 }
 0x134   :  { %v2249_v14 = vpop.f32.mrb[0].mxu1 }
 0x135   :  { %v3565_v16 = vadd.f32 %v2249_v14, %v197_v12  ;;  %v380_v17 = vpop.f32.mrb[1].mxu1 }
 0x136   :  { %v381_v9 = vadd.f32 %v380_v17, %v197_v12 }
 0x138   :  { %v2252_v18 = vpop.f32.mrb[2].mxu1 }
 0x139   :  { %v3567_v20 = vadd.f32 %v2252_v18, %v197_v12  ;;  %v390_v22 = vpop.f32.mrb[3].mxu1 }
 0x13a   :  { %v3569_v24 = vadd.f32 %v390_v22, %v197_v12  ;;  %v669_v22 = vpop.permute.xlu0 %668 }
 0x13c   :  { %v2255_v28 = vpop.f32.mrb[4].mxu1 }
 0x13d   :  { %v3571_v30 = vadd.f32 %v2255_v28, %v197_v12  ;;  %v400_v31 = vpop.f32.mrb[5].mxu1 }
 0x13e   :  { %v3573_v33 = vadd.f32 %v400_v31, %v197_v12  ;;  %v677_v41 = vpop.permute.xlu0 %676 }
 0x140   :  { %v2258_v34 = vpop.f32.mrb[6].mxu1 }
 0x141   :  { %v3575_v35 = vadd.f32 %v2258_v34, %v197_v12  ;;  %v410_v36 = vpop.f32.mrb[7].mxu1 }
 0x142   :  { %v3577_v38 = vadd.f32 %v410_v36, %v197_v12 }
 0x14e   :  { %v562_v46 = vpop.f32.mrb[0].mxu0 }
 0x14f   :  { %v3051_v49 = vadd.f32 %v562_v46, %v3579_v42  ;;  %v564_v52 = vpop.f32.mrb[1].mxu0  ;;  %v679_v46 = vmul.f32 %v677_v41, %v3512_v43 }
 0x150   :  { %v3052_v57 = vadd.f32 %v564_v52, %v3581_v48 }
 0x151   :  { %v2038_v53 = vmul.f32 -1.442695, %v3051_v49 }
 0x152   :  { %v2039_v58 = vmul.f32 -1.442695, %v3052_v57 }
 0x153   :  { %3098 = vpow2.f32 %v2038_v53 }
 0x154   :  { %v633_v59 = vpop.f32.mrb[8].mxu1  ;;  %3100 = vpow2.f32 %v2039_v58 }
 0x155   :  { %v2293_v60 = vpop.f32.mrb[9].mxu1  ;;  %v657_v6 = vadd.f32 %v3588_v4, %v633_v59 }
 0x15d   :  { %v3099_v62 = vpop.eup %3098 }
 0x15e   :  { %v641_v63 = vadd.f32 1.0, %v3099_v62  ;;  %v3101_v1 = vpop.eup %3100 }
 0x15f   :  { %v648_v5 = vadd.f32 1.0, %v3101_v1 }
 0x160   :  { %3102 = vrcp.f32 %v641_v63 }
 0x161   :  { %3104 = vrcp.f32 %v648_v5 }
 0x16a   :  { %v3103_v7 = vpop.eup %3102 }
 0x16b   :  { %v658_v11 = vmul.f32 %v3103_v7, %v657_v6  ;;  %v3105_v18 = vpop.eup %3104 }
 0x16c   :  { %v661_v28 = vsub.f32 1.0, %v3105_v18  ;;  %v663_v36 = vmul.f32 %v3105_v18, %v3512_v43  ;;  %v853_v18 = vpop.permute.xlu1 %852 }
 0x16d   :  { %v659_v14 = vadd.f32 %v658_v11, %v381_v9 }
 0x16f   :  { %3106 = vtanh.f32 %v659_v14 }
 0x179   :  { %v3107_v31 = vpop.eup %3106 }
 0x17a   :  { %v662_v34 = vmul.f32 %v3107_v31, %v661_v28 }
 0x17c   :  { %v664_v40 = vadd.f32 %v663_v36, %v662_v34  ;;  %v862_v36 = vpop.permute.xlu1 %861 }
 0x17e   :  { %v671_v49 = vmul.f32 %v669_v22, %v664_v40 }
 0x180   :  { %672 = vst [vmem:[#allocation13] sm:$0xff] %v671_v49  ;;  %v3593_v52 = vadd.f32 %v679_v46, %v671_v49 }
 0x182   :  { %750 = vmatmul.mubr.f32.vlgmr.msra.gmra.mrb[2].mxu0 %v3593_v52  ;;  %2327 = vmatmul.mubr.f32.vlgmr.msra.gmra.mrb[10].mxu1 %v3593_v52  ;;  %v864_v41 = vmul.f32 %v862_v36, %v3593_v52 }
 0x183   :  { %2718 = vmatpush1.bf16.msra.mxu0 %v3410_v19  ;;  %2749 = vmatpush3.bf16.msra.mxu1 %v3450_v51 }
 0x184   :  { %2720 = vmatprep.subr.bf16.mxu0 %v3413_v23  ;;  %2750 = vmatprep.subr.bf16.mxu1 %v3305_v50 }
 0x185   :  { %934 = vmatprep.mubr.f32.mxu0 %v3303_v0  ;;  %2361 = vmatprep.mubr.msk.f32.mxu1 %vm3306_vm9, %v3303_v0 }
 0x187   :  { %2722 = vmatpush1.bf16.msra.mxu0 %v3416_v25  ;;  %2752 = vmatpush3.bf16.msra.mxu1 %v3460_v61 }
 0x188   :  { %2724 = vmatprep.subr.bf16.mxu0 %v3418_v26  ;;  %2753 = vmatprep.subr.bf16.mxu1 %v3305_v50 }
 0x18b   :  { %2726 = vmatpush1.bf16.msra.mxu0 %v3440_v44  ;;  %2755 = vmatpush3.bf16.msra.mxu1 %v3471_v8 }
 0x18c   :  { %2728 = vmatprep.subr.bf16.mxu0 %v3447_v45  ;;  %2756 = vmatprep.subr.bf16.mxu1 %v3305_v50 }
 0x18f   :  { %2730 = vmatpush1.bf16.msra.mxu0 %v3454_v55  ;;  %2758 = vmatpush3.bf16.msra.mxu1 %v3482_v21 }
 0x190   :  { %2732 = vmatprep.subr.bf16.mxu0 %v3457_v56  ;;  %2759 = vmatprep.subr.bf16.mxu1 %v3305_v50 }
 0x193   :  { %2734 = vmatpush1.bf16.msra.mxu0 %v3465_v2  ;;  %2761 = vmatpush3.bf16.msra.mxu1 %v3493_v32 }
 0x194   :  { %2736 = vmatprep.subr.bf16.mxu0 %v3468_v3  ;;  %2762 = vmatprep.subr.bf16.mxu1 %v3305_v50 }
 0x197   :  { %2738 = vmatpush1.bf16.msra.mxu0 %v3476_v13  ;;  %2764 = vmatpush3.bf16.msra.mxu1 %v3504_v39 }
 0x198   :  { %2740 = vmatprep.subr.bf16.mxu0 %v3479_v15  ;;  %2765 = vmatprep.subr.bf16.mxu1 %v3305_v50 }
 0x19b   :  { %2742 = vmatpush1.bf16.msra.mxu0 %v3487_v27  ;;  %2767 = vmatpush3.bf16.msra.mxu1 %v3516_v47 }
 0x19c   :  { %2744 = vmatprep.subr.bf16.mxu0 %v3490_v29  ;;  %2768 = vmatprep.subr.bf16.mxu1 %v3305_v50 }
 0x19f   :  { %2746 = vmatpush1.bf16.msra.mxu0 %v3500_v37  ;;  %2770 = vmatpush3.bf16.msra.mxu1 %v3524_v54 }
 0x1a0   :  { %2772 = vmatprep.subr.bf16.mxu0 %v3408_v10  ;;  %2803 = vmatprep.subr.bf16.mxu1 %v3305_v50 }
 0x255   :  { %v751_v43 = vpop.f32.mrb[2].mxu0  ;;  %v822_v12 = vpop.f32.mrb[10].mxu1 }
 0x256   :  { %v3053_v17 = vadd.f32 %v751_v43, %v3579_v42  ;;  %v753_v53 = vpop.f32.mrb[3].mxu0  ;;  %v2328_v57 = vpop.f32.mrb[11].mxu1  ;;  %v840_v6 = vadd.f32 %v3588_v4, %v822_v12 }
 0x257   :  { %v3054_v59 = vadd.f32 %v753_v53, %v3581_v48 }
 0x258   :  { %v2041_v58 = vmul.f32 -1.442695, %v3053_v17 }
 0x259   :  { %v2042_v60 = vmul.f32 -1.442695, %v3054_v59 }
 0x25a   :  { %3108 = vpow2.f32 %v2041_v58 }
 0x25b   :  { %3110 = vpow2.f32 %v2042_v60 }
 0x264   :  { %v3109_v62 = vpop.eup %3108 }
 0x265   :  { %v830_v63 = vadd.f32 1.0, %v3109_v62  ;;  %v3111_v1 = vpop.eup %3110 }
 0x266   :  { %v837_v5 = vadd.f32 1.0, %v3111_v1 }
 0x267   :  { %3112 = vrcp.f32 %v830_v63 }
 0x268   :  { %3114 = vrcp.f32 %v837_v5 }
 0x271   :  { %v3113_v7 = vpop.eup %3112 }
 0x272   :  { %v841_v9 = vmul.f32 %v3113_v7, %v840_v6  ;;  %v3115_v14 = vpop.eup %3114 }
 0x273   :  { %v844_v22 = vsub.f32 1.0, %v3115_v14  ;;  %v846_v34 = vmul.f32 %v3115_v14, %v3593_v52 }
 0x274   :  { %v842_v11 = vadd.f32 %v841_v9, %v3565_v16 }
 0x276   :  { %3116 = vtanh.f32 %v842_v11 }
 0x280   :  { %v3117_v28 = vpop.eup %3116 }
 0x281   :  { %v845_v31 = vmul.f32 %v3117_v28, %v844_v22 }
 0x283   :  { %v847_v40 = vadd.f32 %v846_v34, %v845_v31  ;;  %v1038_v31 = vpop.permute.xlu0 %1037  ;;  %v1047_v34 = vpop.permute.xlu1 %1046 }
 0x285   :  { %v855_v46 = vmul.f32 %v853_v18, %v847_v40 }
 0x287   :  { %857 = vst [vmem:[#allocation13 + $0x8] sm:$0xff] %v855_v46  ;;  %v3638_v49 = vadd.f32 %v864_v41, %v855_v46 }
 0x289   :  { %935 = vmatmul.mubr.f32.vlgmr.msra.gmra.mrb[4].mxu0 %v3638_v49  ;;  %2362 = vmatmul.mubr.f32.vlgmr.msra.gmra.mrb[12].mxu1 %v3638_v49  ;;  %v1049_v36 = vmul.f32 %v1047_v34, %v3638_v49 }
 0x28a   :  { %2774 = vmatpush1.bf16.msra.mxu0 %v3410_v19  ;;  %2805 = vmatpush3.bf16.msra.mxu1 %v3450_v51 }
 0x28b   :  { %2776 = vmatprep.subr.bf16.mxu0 %v3413_v23  ;;  %2806 = vmatprep.subr.bf16.mxu1 %v3305_v50 }
 0x28c   :  { %1119 = vmatprep.mubr.f32.mxu0 %v3303_v0  ;;  %2396 = vmatprep.mubr.msk.f32.mxu1 %vm3306_vm9, %v3303_v0 }
 0x28e   :  { %2778 = vmatpush1.bf16.msra.mxu0 %v3416_v25  ;;  %2808 = vmatpush3.bf16.msra.mxu1 %v3460_v61 }
 0x28f   :  { %2780 = vmatprep.subr.bf16.mxu0 %v3418_v26  ;;  %2809 = vmatprep.subr.bf16.mxu1 %v3305_v50 }
 0x292   :  { %2782 = vmatpush1.bf16.msra.mxu0 %v3440_v44  ;;  %2811 = vmatpush3.bf16.msra.mxu1 %v3471_v8 }
 0x293   :  { %2784 = vmatprep.subr.bf16.mxu0 %v3447_v45  ;;  %2812 = vmatprep.subr.bf16.mxu1 %v3305_v50 }
 0x296   :  { %2786 = vmatpush1.bf16.msra.mxu0 %v3454_v55  ;;  %2814 = vmatpush3.bf16.msra.mxu1 %v3482_v21 }
 0x297   :  { %2788 = vmatprep.subr.bf16.mxu0 %v3457_v56  ;;  %2815 = vmatprep.subr.bf16.mxu1 %v3305_v50 }
 0x29a   :  { %2790 = vmatpush1.bf16.msra.mxu0 %v3465_v2  ;;  %2817 = vmatpush3.bf16.msra.mxu1 %v3493_v32 }
 0x29b   :  { %2792 = vmatprep.subr.bf16.mxu0 %v3468_v3  ;;  %2818 = vmatprep.subr.bf16.mxu1 %v3305_v50 }
 0x29e   :  { %2794 = vmatpush1.bf16.msra.mxu0 %v3476_v13  ;;  %2820 = vmatpush3.bf16.msra.mxu1 %v3504_v39 }
 0x29f   :  { %2796 = vmatprep.subr.bf16.mxu0 %v3479_v15  ;;  %2821 = vmatprep.subr.bf16.mxu1 %v3305_v50 }
 0x2a2   :  { %2798 = vmatpush1.bf16.msra.mxu0 %v3487_v27  ;;  %2823 = vmatpush3.bf16.msra.mxu1 %v3516_v47 }
 0x2a3   :  { %2800 = vmatprep.subr.bf16.mxu0 %v3490_v29  ;;  %2824 = vmatprep.subr.bf16.mxu1 %v3305_v50 }
 0x2a6   :  { %2802 = vmatpush1.bf16.msra.mxu0 %v3500_v37  ;;  %2826 = vmatpush3.bf16.msra.mxu1 %v3524_v54 }
 0x2a7   :  { %2828 = vmatprep.subr.bf16.mxu0 %v3408_v10  ;;  %2859 = vmatprep.subr.bf16.mxu1 %v3305_v50 }
 0x35c   :  { %v936_v16 = vpop.f32.mrb[4].mxu0  ;;  %v1007_v52 = vpop.f32.mrb[12].mxu1 }
 0x35d   :  { %v3055_v43 = vadd.f32 %v936_v16, %v3579_v42  ;;  %v938_v12 = vpop.f32.mrb[5].mxu0  ;;  %v2363_v17 = vpop.f32.mrb[13].mxu1  ;;  %v1025_v1 = vadd.f32 %v3588_v4, %v1007_v52 }
 0x35e   :  { %v3056_v57 = vadd.f32 %v938_v12, %v3581_v48 }
 0x35f   :  { %v2043_v53 = vmul.f32 -1.442695, %v3055_v43 }
 0x360   :  { %v2044_v58 = vmul.f32 -1.442695, %v3056_v57 }
 0x361   :  { %3118 = vpow2.f32 %v2043_v53 }
 0x362   :  { %3120 = vpow2.f32 %v2044_v58 }
 0x36b   :  { %v3119_v59 = vpop.eup %3118 }
 0x36c   :  { %v1015_v60 = vadd.f32 1.0, %v3119_v59  ;;  %v3121_v62 = vpop.eup %3120 }
 0x36d   :  { %v1022_v63 = vadd.f32 1.0, %v3121_v62 }
 0x36e   :  { %3122 = vrcp.f32 %v1015_v60 }
 0x36f   :  { %3124 = vrcp.f32 %v1022_v63 }
 0x378   :  { %v3123_v5 = vpop.eup %3122 }
 0x379   :  { %v1026_v6 = vmul.f32 %v3123_v5, %v1025_v1  ;;  %v3125_v9 = vpop.eup %3124 }
 0x37a   :  { %v1029_v11 = vsub.f32 1.0, %v3125_v9  ;;  %v1031_v22 = vmul.f32 %v3125_v9, %v3638_v49 }
 0x37b   :  { %v1027_v7 = vadd.f32 %v1026_v6, %v3569_v24 }
 0x37d   :  { %3126 = vtanh.f32 %v1027_v7 }
 0x387   :  { %v3127_v14 = vpop.eup %3126 }
 0x388   :  { %v1030_v18 = vmul.f32 %v3127_v14, %v1029_v11 }
 0x38a   :  { %v1032_v28 = vadd.f32 %v1031_v22, %v1030_v18  ;;  %v1223_v18 = vpop.permute.xlu0 %1222  ;;  %v1232_v22 = vpop.permute.xlu1 %1231 }
 0x38c   :  { %v1040_v40 = vmul.f32 %v1038_v31, %v1032_v28 }
 0x38e   :  { %1042 = vst [vmem:[#allocation13 + $0x10] sm:$0xff] %v1040_v40  ;;  %v3683_v41 = vadd.f32 %v1049_v36, %v1040_v40 }
 0x390   :  { %1120 = vmatmul.mubr.f32.vlgmr.msra.gmra.mrb[6].mxu0 %v3683_v41  ;;  %2397 = vmatmul.mubr.f32.vlgmr.msra.gmra.mrb[14].mxu1 %v3683_v41  ;;  %v1234_v31 = vmul.f32 %v1232_v22, %v3683_v41 }
 0x391   :  { %2830 = vmatpush1.bf16.msra.mxu0 %v3410_v19  ;;  %2861 = vmatpush3.bf16.msra.mxu1 %v3450_v51 }
 0x392   :  { %2832 = vmatprep.subr.bf16.mxu0 %v3413_v23  ;;  %2862 = vmatprep.subr.bf16.mxu1 %v3305_v50 }
 0x393   :  { %1304 = vmatprep.mubr.f32.mxu0 %v3303_v0  ;;  %2431 = vmatprep.mubr.msk.f32.mxu1 %vm3306_vm9, %v3303_v0 }
 0x395   :  { %2834 = vmatpush1.bf16.msra.mxu0 %v3416_v25  ;;  %2864 = vmatpush3.bf16.msra.mxu1 %v3460_v61 }
 0x396   :  { %2836 = vmatprep.subr.bf16.mxu0 %v3418_v26  ;;  %2865 = vmatprep.subr.bf16.mxu1 %v3305_v50 }
 0x399   :  { %2838 = vmatpush1.bf16.msra.mxu0 %v3440_v44  ;;  %2867 = vmatpush3.bf16.msra.mxu1 %v3471_v8 }
 0x39a   :  { %2840 = vmatprep.subr.bf16.mxu0 %v3447_v45  ;;  %2868 = vmatprep.subr.bf16.mxu1 %v3305_v50 }
 0x39d   :  { %2842 = vmatpush1.bf16.msra.mxu0 %v3454_v55  ;;  %2870 = vmatpush3.bf16.msra.mxu1 %v3482_v21 }
 0x39e   :  { %2844 = vmatprep.subr.bf16.mxu0 %v3457_v56  ;;  %2871 = vmatprep.subr.bf16.mxu1 %v3305_v50 }
 0x3a1   :  { %2846 = vmatpush1.bf16.msra.mxu0 %v3465_v2  ;;  %2873 = vmatpush3.bf16.msra.mxu1 %v3493_v32 }
 0x3a2   :  { %2848 = vmatprep.subr.bf16.mxu0 %v3468_v3  ;;  %2874 = vmatprep.subr.bf16.mxu1 %v3305_v50 }
 0x3a5   :  { %2850 = vmatpush1.bf16.msra.mxu0 %v3476_v13  ;;  %2876 = vmatpush3.bf16.msra.mxu1 %v3504_v39 }
 0x3a6   :  { %2852 = vmatprep.subr.bf16.mxu0 %v3479_v15  ;;  %2877 = vmatprep.subr.bf16.mxu1 %v3305_v50 }
 0x3a9   :  { %2854 = vmatpush1.bf16.msra.mxu0 %v3487_v27  ;;  %2879 = vmatpush3.bf16.msra.mxu1 %v3516_v47 }
 0x3aa   :  { %2856 = vmatprep.subr.bf16.mxu0 %v3490_v29  ;;  %2880 = vmatprep.subr.bf16.mxu1 %v3305_v50 }
 0x3ad   :  { %2858 = vmatpush1.bf16.msra.mxu0 %v3500_v37  ;;  %2882 = vmatpush3.bf16.msra.mxu1 %v3524_v54 }
 0x3ae   :  { %2884 = vmatprep.subr.bf16.mxu0 %v3408_v10  ;;  %2915 = vmatprep.subr.bf16.mxu1 %v3305_v50 }
 0x463   :  { %v1121_v24 = vpop.f32.mrb[6].mxu0  ;;  %v1192_v46 = vpop.f32.mrb[14].mxu1 }
 0x464   :  { %v3057_v49 = vadd.f32 %v1121_v24, %v3579_v42  ;;  %v1123_v16 = vpop.f32.mrb[7].mxu0  ;;  %v2398_v52 = vpop.f32.mrb[15].mxu1  ;;  %v1210_v60 = vadd.f32 %v3588_v4, %v1192_v46 }
 0x465   :  { %v3058_v12 = vadd.f32 %v1123_v16, %v3581_v48 }
 0x466   :  { %v2045_v43 = vmul.f32 -1.442695, %v3057_v49 }
 0x467   :  { %v2046_v17 = vmul.f32 -1.442695, %v3058_v12 }
 0x468   :  { %3128 = vpow2.f32 %v2045_v43 }
 0x469   :  { %3130 = vpow2.f32 %v2046_v17 }
 0x472   :  { %v3129_v53 = vpop.eup %3128 }
 0x473   :  { %v1200_v57 = vadd.f32 1.0, %v3129_v53  ;;  %v3131_v58 = vpop.eup %3130 }
 0x474   :  { %v1207_v59 = vadd.f32 1.0, %v3131_v58 }
 0x475   :  { %3132 = vrcp.f32 %v1200_v57 }
 0x476   :  { %3134 = vrcp.f32 %v1207_v59 }
 0x47f   :  { %v3133_v62 = vpop.eup %3132 }
 0x480   :  { %v1211_v63 = vmul.f32 %v3133_v62, %v1210_v60  ;;  %v3135_v5 = vpop.eup %3134 }
 0x481   :  { %v1214_v6 = vsub.f32 1.0, %v3135_v5  ;;  %v1216_v11 = vmul.f32 %v3135_v5, %v3683_v41 }
 0x482   :  { %v1212_v1 = vadd.f32 %v1211_v63, %v3567_v20 }
 0x484   :  { %3136 = vtanh.f32 %v1212_v1 }
 0x48e   :  { %v3137_v7 = vpop.eup %3136 }
 0x48f   :  { %v1215_v9 = vmul.f32 %v3137_v7, %v1214_v6  ;;  %v1408_v7 = vpop.permute.xlu0 %1407 }
 0x491   :  { %v1217_v14 = vadd.f32 %v1216_v11, %v1215_v9  ;;  %v1417_v9 = vpop.permute.xlu1 %1416 }
 0x493   :  { %v1225_v28 = vmul.f32 %v1223_v18, %v1217_v14 }
 0x495   :  { %1227 = vst [vmem:[#allocation13 + $0x18] sm:$0xff] %v1225_v28  ;;  %v3728_v34 = vadd.f32 %v1234_v31, %v1225_v28 }
 0x497   :  { %1305 = vmatmul.mubr.f32.vlgmr.msra.gmra.mrb[8].mxu0 %v3728_v34  ;;  %2432 = vmatmul.mubr.f32.vlgmr.msra.gmra.mrb[16].mxu1 %v3728_v34  ;;  %v1419_v14 = vmul.f32 %v1417_v9, %v3728_v34 }
 0x498   :  { %2886 = vmatpush1.bf16.msra.mxu0 %v3410_v19  ;;  %2917 = vmatpush3.bf16.msra.mxu1 %v3450_v51 }
 0x499   :  { %2888 = vmatprep.subr.bf16.mxu0 %v3413_v23  ;;  %2918 = vmatprep.subr.bf16.mxu1 %v3305_v50 }
 0x49a   :  { %1489 = vmatprep.mubr.f32.mxu0 %v3303_v0  ;;  %2466 = vmatprep.mubr.msk.f32.mxu1 %vm3306_vm9, %v3303_v0 }
 0x49c   :  { %2890 = vmatpush1.bf16.msra.mxu0 %v3416_v25  ;;  %2920 = vmatpush3.bf16.msra.mxu1 %v3460_v61 }
 0x49d   :  { %2892 = vmatprep.subr.bf16.mxu0 %v3418_v26  ;;  %2921 = vmatprep.subr.bf16.mxu1 %v3305_v50 }
 0x4a0   :  { %2894 = vmatpush1.bf16.msra.mxu0 %v3440_v44  ;;  %2923 = vmatpush3.bf16.msra.mxu1 %v3471_v8 }
 0x4a1   :  { %2896 = vmatprep.subr.bf16.mxu0 %v3447_v45  ;;  %2924 = vmatprep.subr.bf16.mxu1 %v3305_v50 }
 0x4a4   :  { %2898 = vmatpush1.bf16.msra.mxu0 %v3454_v55  ;;  %2926 = vmatpush3.bf16.msra.mxu1 %v3482_v21 }
 0x4a5   :  { %2900 = vmatprep.subr.bf16.mxu0 %v3457_v56  ;;  %2927 = vmatprep.subr.bf16.mxu1 %v3305_v50 }
 0x4a8   :  { %2902 = vmatpush1.bf16.msra.mxu0 %v3465_v2  ;;  %2929 = vmatpush3.bf16.msra.mxu1 %v3493_v32 }
 0x4a9   :  { %2904 = vmatprep.subr.bf16.mxu0 %v3468_v3  ;;  %2930 = vmatprep.subr.bf16.mxu1 %v3305_v50 }
 0x4ac   :  { %2906 = vmatpush1.bf16.msra.mxu0 %v3476_v13  ;;  %2932 = vmatpush3.bf16.msra.mxu1 %v3504_v39 }
 0x4ad   :  { %2908 = vmatprep.subr.bf16.mxu0 %v3479_v15  ;;  %2933 = vmatprep.subr.bf16.mxu1 %v3305_v50 }
 0x4b0   :  { %2910 = vmatpush1.bf16.msra.mxu0 %v3487_v27  ;;  %2935 = vmatpush3.bf16.msra.mxu1 %v3516_v47 }
 0x4b1   :  { %2912 = vmatprep.subr.bf16.mxu0 %v3490_v29  ;;  %2936 = vmatprep.subr.bf16.mxu1 %v3305_v50 }
 0x4b4   :  { %2914 = vmatpush1.bf16.msra.mxu0 %v3500_v37  ;;  %2938 = vmatpush3.bf16.msra.mxu1 %v3524_v54 }
 0x4b5   :  { %2940 = vmatprep.subr.bf16.mxu0 %v3408_v10  ;;  %2971 = vmatprep.subr.bf16.mxu1 %v3305_v50 }
 0x56a   :  { %v1306_v20 = vpop.f32.mrb[8].mxu0  ;;  %v1377_v36 = vpop.f32.mrb[16].mxu1 }
 0x56b   :  { %v3059_v40 = vadd.f32 %v1306_v20, %v3579_v42  ;;  %v1308_v41 = vpop.f32.mrb[9].mxu0  ;;  %v2433_v24 = vpop.f32.mrb[17].mxu1  ;;  %v1395_v53 = vadd.f32 %v3588_v4, %v1377_v36 }
 0x56c   :  { %v3060_v49 = vadd.f32 %v1308_v41, %v3581_v48 }
 0x56d   :  { %v2047_v46 = vmul.f32 -1.442695, %v3059_v40 }
 0x56e   :  { %v2048_v16 = vmul.f32 -1.442695, %v3060_v49 }
 0x56f   :  { %3138 = vpow2.f32 %v2047_v46 }
 0x570   :  { %3140 = vpow2.f32 %v2048_v16 }
 0x579   :  { %v3139_v52 = vpop.eup %3138 }
 0x57a   :  { %v1385_v43 = vadd.f32 1.0, %v3139_v52  ;;  %v3141_v12 = vpop.eup %3140 }
 0x57b   :  { %v1392_v17 = vadd.f32 1.0, %v3141_v12 }
 0x57c   :  { %3142 = vrcp.f32 %v1385_v43 }
 0x57d   :  { %3144 = vrcp.f32 %v1392_v17 }
 0x586   :  { %v3143_v57 = vpop.eup %3142 }
 0x587   :  { %v1396_v58 = vmul.f32 %v3143_v57, %v1395_v53  ;;  %v3145_v60 = vpop.eup %3144 }
 0x588   :  { %v1399_v62 = vsub.f32 1.0, %v3145_v60  ;;  %v1401_v5 = vmul.f32 %v3145_v60, %v3728_v34  ;;  %v1593_v60 = vpop.permute.xlu0 %1592 }
 0x589   :  { %v1397_v59 = vadd.f32 %v1396_v58, %v3573_v33 }
 0x58b   :  { %3146 = vtanh.f32 %v1397_v59 }
 0x595   :  { %v3147_v63 = vpop.eup %3146 }
 0x596   :  { %v1400_v1 = vmul.f32 %v3147_v63, %v1399_v62  ;;  %v1602_v62 = vpop.permute.xlu1 %1601 }
 0x598   :  { %v1402_v6 = vadd.f32 %v1401_v5, %v1400_v1 }
 0x59a   :  { %v1410_v11 = vmul.f32 %v1408_v7, %v1402_v6 }
 0x59c   :  { %1412 = vst [vmem:[#allocation13 + $0x20] sm:$0xff] %v1410_v11  ;;  %v3773_v18 = vadd.f32 %v1419_v14, %v1410_v11 }
 0x59e   :  { %1490 = vmatmul.mubr.f32.vlgmr.msra.gmra.mrb[10].mxu0 %v3773_v18  ;;  %2467 = vmatmul.mubr.f32.vlgmr.msra.gmra.mrb[18].mxu1 %v3773_v18  ;;  %v1604_v1 = vmul.f32 %v1602_v62, %v3773_v18 }
 0x59f   :  { %2942 = vmatpush1.bf16.msra.mxu0 %v3410_v19  ;;  %2973 = vmatpush3.bf16.msra.mxu1 %v3450_v51 }
 0x5a0   :  { %2944 = vmatprep.subr.bf16.mxu0 %v3413_v23  ;;  %2974 = vmatprep.subr.bf16.mxu1 %v3305_v50 }
 0x5a1   :  { %1674 = vmatprep.mubr.f32.mxu0 %v3303_v0  ;;  %2501 = vmatprep.mubr.msk.f32.mxu1 %vm3306_vm9, %v3303_v0 }
 0x5a3   :  { %2946 = vmatpush1.bf16.msra.mxu0 %v3416_v25  ;;  %2976 = vmatpush3.bf16.msra.mxu1 %v3460_v61 }
 0x5a4   :  { %2948 = vmatprep.subr.bf16.mxu0 %v3418_v26  ;;  %2977 = vmatprep.subr.bf16.mxu1 %v3305_v50 }
 0x5a7   :  { %2950 = vmatpush1.bf16.msra.mxu0 %v3440_v44  ;;  %2979 = vmatpush3.bf16.msra.mxu1 %v3471_v8 }
 0x5a8   :  { %2952 = vmatprep.subr.bf16.mxu0 %v3447_v45  ;;  %2980 = vmatprep.subr.bf16.mxu1 %v3305_v50 }
 0x5ab   :  { %2954 = vmatpush1.bf16.msra.mxu0 %v3454_v55  ;;  %2982 = vmatpush3.bf16.msra.mxu1 %v3482_v21 }
 0x5ac   :  { %2956 = vmatprep.subr.bf16.mxu0 %v3457_v56  ;;  %2983 = vmatprep.subr.bf16.mxu1 %v3305_v50 }
 0x5af   :  { %2958 = vmatpush1.bf16.msra.mxu0 %v3465_v2  ;;  %2985 = vmatpush3.bf16.msra.mxu1 %v3493_v32 }
 0x5b0   :  { %2960 = vmatprep.subr.bf16.mxu0 %v3468_v3  ;;  %2986 = vmatprep.subr.bf16.mxu1 %v3305_v50 }
 0x5b3   :  { %2962 = vmatpush1.bf16.msra.mxu0 %v3476_v13  ;;  %2988 = vmatpush3.bf16.msra.mxu1 %v3504_v39 }
 0x5b4   :  { %2964 = vmatprep.subr.bf16.mxu0 %v3479_v15  ;;  %2989 = vmatprep.subr.bf16.mxu1 %v3305_v50 }
 0x5b7   :  { %2966 = vmatpush1.bf16.msra.mxu0 %v3487_v27  ;;  %2991 = vmatpush3.bf16.msra.mxu1 %v3516_v47 }
 0x5b8   :  { %2968 = vmatprep.subr.bf16.mxu0 %v3490_v29  ;;  %2992 = vmatprep.subr.bf16.mxu1 %v3305_v50 }
 0x5bb   :  { %2970 = vmatpush1.bf16.msra.mxu0 %v3500_v37  ;;  %2994 = vmatpush3.bf16.msra.mxu1 %v3524_v54 }
 0x5bc   :  { %2996 = vmatprep.subr.bf16.mxu0 %v3408_v10  ;;  %3027 = vmatprep.subr.bf16.mxu1 %v3305_v50 }
 0x671   :  { %v1491_v33 = vpop.f32.mrb[10].mxu0  ;;  %v1562_v22 = vpop.f32.mrb[18].mxu1 }
 0x672   :  { %v3061_v28 = vadd.f32 %v1491_v33, %v3579_v42  ;;  %v1493_v31 = vpop.f32.mrb[11].mxu0  ;;  %v2468_v34 = vpop.f32.mrb[19].mxu1  ;;  %v1580_v10 = vadd.f32 %v3588_v4, %v1562_v22 }
 0x673   :  { %v3062_v36 = vadd.f32 %v1493_v31, %v3581_v48 }
 0x674   :  { %v2049_v20 = vmul.f32 -1.442695, %v3061_v28 }
 0x675   :  { %v2050_v40 = vmul.f32 -1.442695, %v3062_v36 }
 0x676   :  { %3148 = vpow2.f32 %v2049_v20 }
 0x677   :  { %3150 = vpow2.f32 %v2050_v40 }
 0x680   :  { %v3149_v41 = vpop.eup %3148 }
 0x681   :  { %v1570_v24 = vadd.f32 1.0, %v3149_v41  ;;  %v3151_v46 = vpop.eup %3150 }
 0x682   :  { %v1577_v49 = vadd.f32 1.0, %v3151_v46 }
 0x683   :  { %3152 = vrcp.f32 %v1570_v24 }
 0x684   :  { %3154 = vrcp.f32 %v1577_v49 }
 0x68d   :  { %v3153_v16 = vpop.eup %3152 }
 0x68e   :  { %v1581_v52 = vmul.f32 %v3153_v16, %v1580_v10  ;;  %v3155_v12 = vpop.eup %3154 }
 0x68f   :  { %v1584_v17 = vsub.f32 1.0, %v3155_v12  ;;  %v1586_v58 = vmul.f32 %v3155_v12, %v3773_v18 }
 0x690   :  { %v1582_v43 = vadd.f32 %v1581_v52, %v3571_v30 }
 0x692   :  { %3156 = vtanh.f32 %v1582_v43 }
 0x69c   :  { %v3157_v53 = vpop.eup %3156 }
 0x69d   :  { %v1585_v57 = vmul.f32 %v3157_v53, %v1584_v17 }
 0x69f   :  { %v1587_v59 = vadd.f32 %v1586_v58, %v1585_v57 }
 0x6a1   :  { %v1595_v63 = vmul.f32 %v1593_v60, %v1587_v59 }
 0x6a3   :  { %1597 = vst [vmem:[#allocation13 + $0x28] sm:$0xff] %v1595_v63  ;;  %v3818_v5 = vadd.f32 %v1604_v1, %v1595_v63 }
 0x6a5   :  { %1675 = vmatmul.mubr.f32.vlgmr.msra.gmra.mrb[12].mxu0 %v3818_v5  ;;  %2502 = vmatmul.mubr.f32.vlgmr.msra.gmra.mrb[20].mxu1 %v3818_v5 }
 0x6a6   :  { %2998 = vmatpush1.bf16.msra.mxu0 %v3410_v19  ;;  %3029 = vmatpush3.bf16.msra.mxu1 %v3450_v51 }
 0x6a7   :  { %3000 = vmatprep.subr.bf16.mxu0 %v3413_v23  ;;  %3030 = vmatprep.subr.bf16.mxu1 %v3305_v50 }
 0x6a8   :  { %1859 = vmatprep.mubr.f32.mxu0 %v3303_v0  ;;  %2536 = vmatprep.mubr.msk.f32.mxu1 %vm3306_vm9, %v3303_v0 }
 0x6aa   :  { %3002 = vmatpush1.bf16.msra.mxu0 %v3416_v25  ;;  %3032 = vmatpush3.bf16.msra.mxu1 %v3460_v61 }
 0x6ab   :  { %3004 = vmatprep.subr.bf16.mxu0 %v3418_v26  ;;  %3033 = vmatprep.subr.bf16.mxu1 %v3305_v50 }
 0x6ae   :  { %3006 = vmatpush1.bf16.msra.mxu0 %v3440_v44  ;;  %3035 = vmatpush3.bf16.msra.mxu1 %v3471_v8 }
 0x6af   :  { %3008 = vmatprep.subr.bf16.mxu0 %v3447_v45  ;;  %3036 = vmatprep.subr.bf16.mxu1 %v3305_v50 }
 0x6b2   :  { %3010 = vmatpush1.bf16.msra.mxu0 %v3454_v55  ;;  %3038 = vmatpush3.bf16.msra.mxu1 %v3482_v21 }
 0x6b3   :  { %3012 = vmatprep.subr.bf16.mxu0 %v3457_v56  ;;  %3039 = vmatprep.subr.bf16.mxu1 %v3305_v50 }
 0x6b6   :  { %3014 = vmatpush1.bf16.msra.mxu0 %v3465_v2  ;;  %3041 = vmatpush3.bf16.msra.mxu1 %v3493_v32 }
 0x6b7   :  { %3016 = vmatprep.subr.bf16.mxu0 %v3468_v3  ;;  %3042 = vmatprep.subr.bf16.mxu1 %v3305_v50 }
 0x6ba   :  { %3018 = vmatpush1.bf16.msra.mxu0 %v3476_v13  ;;  %3044 = vmatpush3.bf16.msra.mxu1 %v3504_v39  ;;  %v1778_v39 = vpop.permute.xlu0 %1777 }
 0x6bb   :  { %3020 = vmatprep.subr.bf16.mxu0 %v3479_v15  ;;  %3045 = vmatprep.subr.bf16.mxu1 %v3305_v50 }
 0x6be   :  { %3022 = vmatpush1.bf16.msra.mxu0 %v3487_v27  ;;  %3047 = vmatpush3.bf16.msra.mxu1 %v3516_v47  ;;  %v1787_v47 = vpop.permute.xlu1 %1786  ;;  %v1963_v52 = vpop.permute.xlu0 %1962 }
 0x6bf   :  { %3024 = vmatprep.subr.bf16.mxu0 %v3490_v29  ;;  %3048 = vmatprep.subr.bf16.mxu1 %v3305_v50  ;;  %v1789_v30 = vmul.f32 %v1787_v47, %v3818_v5 }
 0x6c2   :  { %3026 = vmatpush1.bf16.msra.mxu0 %v3500_v37  ;;  %3050 = vmatpush3.bf16.msra.mxu1 %v3524_v54  ;;  %v1972_v43 = vpop.permute.xlu1 %1971 }
 0x778   :  { %v1676_v0 = vpop.f32.mrb[12].mxu0  ;;  %v1747_v19 = vpop.f32.mrb[20].mxu1 }
 0x779   :  { %v3063_v23 = vadd.f32 %v1676_v0, %v3579_v42  ;;  %v1678_v25 = vpop.f32.mrb[13].mxu0  ;;  %v2503_v26 = vpop.f32.mrb[21].mxu1  ;;  %v1765_v2 = vadd.f32 %v3588_v4, %v1747_v19 }
 0x77a   :  { %v3064_v45 = vadd.f32 %v1678_v25, %v3581_v48 }
 0x77b   :  { %v2051_v44 = vmul.f32 -1.442695, %v3063_v23 }
 0x77c   :  { %v2052_v51 = vmul.f32 -1.442695, %v3064_v45 }
 0x77d   :  { %3158 = vpow2.f32 %v2051_v44 }
 0x77e   :  { %3160 = vpow2.f32 %v2052_v51 }
 0x787   :  { %v3159_v55 = vpop.eup %3158 }
 0x788   :  { %v1755_v56 = vadd.f32 1.0, %v3159_v55  ;;  %v3161_v50 = vpop.eup %3160 }
 0x789   :  { %v1762_v61 = vadd.f32 1.0, %v3161_v50 }
 0x78a   :  { %3162 = vrcp.f32 %v1755_v56 }
 0x78b   :  { %3164 = vrcp.f32 %v1762_v61 }
 0x794   :  { %v3163_v3 = vpop.eup %3162 }
 0x795   :  { %v1766_v8 = vmul.f32 %v3163_v3, %v1765_v2  ;;  %v3165_v15 = vpop.eup %3164 }
 0x796   :  { %v1769_v21 = vsub.f32 1.0, %v3165_v15  ;;  %v1771_v32 = vmul.f32 %v3165_v15, %v3818_v5 }
 0x797   :  { %v1767_v13 = vadd.f32 %v1766_v8, %v3577_v38 }
 0x799   :  { %3166 = vtanh.f32 %v1767_v13 }
 0x7a3   :  { %v3167_v27 = vpop.eup %3166 }
 0x7a4   :  { %v1770_v29 = vmul.f32 %v3167_v27, %v1769_v21 }
 0x7a6   :  { %v1772_v37 = vadd.f32 %v1771_v32, %v1770_v29 }
 0x7a8   :  { %v1780_v54 = vmul.f32 %v1778_v39, %v1772_v37 }
 0x7aa   :  { %1782 = vst [vmem:[#allocation13 + $0x30] sm:$0xff] %v1780_v54  ;;  %v1790_v6 = vadd.f32 %v1789_v30, %v1780_v54 }
 0x7ac   :  { %1860 = vmatmul.mubr.f32.vlgmr.msra.gmra.mrb[14].mxu0 %v1790_v6  ;;  %2537 = vmatmul.mubr.f32.vlgmr.msra.gmra.mrb[22].mxu1 %v1790_v6 }
 0x87f   :  { %v1861_v7 = vpop.f32.mrb[14].mxu0  ;;  %v1932_v9 = vpop.f32.mrb[22].mxu1 }
 0x880   :  { %v3065_v38 = vadd.f32 %v1861_v7, %v3579_v42  ;;  %v1863_v11 = vpop.f32.mrb[15].mxu0  ;;  %v2538_v14 = vpop.f32.mrb[23].mxu1  ;;  %v1950_v36 = vadd.f32 %v3588_v4, %v1932_v9  ;;  %v1974_v4 = vmul.f32 %v1972_v43, %v1790_v6 }
 0x881   :  { %v3066_v33 = vadd.f32 %v1863_v11, %v3581_v48 }
 0x882   :  { %v2053_v18 = vmul.f32 -1.442695, %v3065_v38 }
 0x883   :  { %v2054_v22 = vmul.f32 -1.442695, %v3066_v33 }
 0x884   :  { %3168 = vpow2.f32 %v2053_v18 }
 0x885   :  { %3170 = vpow2.f32 %v2054_v22 }
 0x88e   :  { %v3169_v28 = vpop.eup %3168 }
 0x88f   :  { %v1940_v31 = vadd.f32 1.0, %v3169_v28  ;;  %v3171_v34 = vpop.eup %3170 }
 0x890   :  { %v1947_v20 = vadd.f32 1.0, %v3171_v34 }
 0x891   :  { %3172 = vrcp.f32 %v1940_v31 }
 0x892   :  { %3174 = vrcp.f32 %v1947_v20 }
 0x89b   :  { %v3173_v40 = vpop.eup %3172 }
 0x89c   :  { %v1951_v41 = vmul.f32 %v3173_v40, %v1950_v36  ;;  %v3175_v24 = vpop.eup %3174 }
 0x89d   :  { %v1954_v46 = vsub.f32 1.0, %v3175_v24  ;;  %v1956_v10 = vmul.f32 %v3175_v24, %v1790_v6 }
 0x89e   :  { %v1952_v42 = vadd.f32 %v1951_v41, %v3575_v35 }
 0x8a0   :  { %3176 = vtanh.f32 %v1952_v42 }
 0x8aa   :  { %v3177_v49 = vpop.eup %3176 }
 0x8ab   :  { %v1955_v48 = vmul.f32 %v3177_v49, %v1954_v46 }
 0x8ad   :  { %v1957_v16 = vadd.f32 %v1956_v10, %v1955_v48 }
 0x8af   :  { %v1965_v12 = vmul.f32 %v1963_v52, %v1957_v16 }
 0x8b1   :  { %1967 = vst [vmem:[#allocation13 + $0x38] sm:$0xff] %v1965_v12  ;;  %v1975_v17 = vadd.f32 %v1974_v4, %v1965_v12 }
 0x8b2   :  { %3255 = shalt.err (!%p3252_p0)
}
 0x8b3   :  { %s3256_s13 = scalar_lea.hbm %s3900_s8, 1024 }
 0x8b4   :  { %p3257_p1 = scmp.ne.s32.totalorder %s3900_s8, %s3256_s13  ;;  %p3260_p2 = scmp.lt.u32.totalorder %s3256_s13, %s3900_s8 }
 0x8b6   :  { %p3262_p3 = pnand %p3260_p2, %p3257_p1 }
 0x8b8   :  { %3265 = shalt.err (!%p3262_p3)
}
 0x8b9   :  { %2000 = dma.vmem_to_hbm [thread:$0]  %s1995_s27, 1024, %s3900_s8, [#allocation9], %s3300_s3, %s3300_s3, %s3301_s30   ;;  %1977 = vst [vmem:[#allocation14] sm:$0xff] %v1975_v17 }
 0x8ba   :  { %s3266_s22 = scalar_lea.vmem %s2008_s29, 128  ;;  %p3271_p5 = scmp.lt.s32.totalorder %s2008_s29, %s2008_s29 }
 0x8bb   :  { %p3267_p4 = scmp.ne.s32.totalorder %s2008_s29, %s3266_s22  ;;  %p3272_p6 = scmp.lt.s32.totalorder %s3266_s22, %s3266_s22 }
 0x8bd   :  { %p3273_p7 = por %p3272_p6, %p3271_p5 }
 0x8bf   :  { %p3274_p8 = pnand %p3273_p7, %p3267_p4 }
 0x8c1   :  { %3277 = shalt.err (!%p3274_p8)
}
 0x8c2   :  { %s3278_s1 = scalar_lea.hbm %s3901_s9, 128 }
 0x8c3   :  { %p3279_p9 = scmp.ne.s32.totalorder %s3901_s9, %s3278_s1  ;;  %p3282_p10 = scmp.lt.u32.totalorder %s3278_s1, %s3901_s9 }
 0x8c5   :  { %p3284_p11 = pnand %p3282_p10, %p3279_p9 }
 0x8c7   :  { %3287 = shalt.err (!%p3284_p11)
}
 0x8c8   :  { %2010 = dma.vmem_to_hbm [thread:$0]  %s2008_s29, 128, %s3901_s9, [#allocation15]  }
 0x8c9   :  { %3292 = dma.done.wait [#allocation9], 1024  }
 0x8ca   :  { %3293 = vsyncadd [#allocation9], 4294966272 }
 0x8cb   :  { %3294 = dma.done.wait [#allocation15], 128  }
 0x8cc   :  { %3295 = vsyncadd [#allocation15], 4294967168 }
 0x8cd   :  { %2017 = vsyncpa [#allocation8], 1 }
 0x8ce   :  { %2018 = vsyncpa [#allocation11], 1 }
 0x8cf   :  { %2019 = vsyncpa [#allocation9], 1 }
 0x8d0   :  { %2020 = vsyncpa [#allocation15], 1 }

</bundles_post_ra>
